<compile_context>
chip_gen: v7x
topology: tpu7x:2x2x1
jax: 0.10.0
libtpu: 0.0.40
codegen_flags: <defaults>
</compile_context>

<pallas_src>
import math

import jax
import jax.numpy as jnp
from jax import lax
from jax.experimental import pallas as pl
from jax.experimental.pallas import tpu as pltpu


# ----------------------------------------------------------------------------
# Fused per-layer kernel (one grid step == one batch element)
# ----------------------------------------------------------------------------
def _make_layer_kernel(S, D, H, hd, approx_recip):
    scale = 1.0 / math.sqrt(hd)

    def layer_norm(z, g, b):
        mu = jnp.mean(z, axis=-1, keepdims=True)
        var = jnp.mean((z - mu) ** 2, axis=-1, keepdims=True)
        return (z - mu) * lax.rsqrt(var + 1e-5) * g + b

    def kernel(y_ref, wqkv_ref, bqkv_ref, wo_ref, bo_ref, g1_ref, be1_ref,
               w1_ref, b1_ref, w2_ref, b2_ref, g3_ref, be3_ref,
               o_ref, u_ref):
        cd = wqkv_ref.dtype          # MXU operand dtype (f32 or bf16)
        y = y_ref[0]                 # (S, D) float32

        # ---- fused QKV projection: one wide (S,D)x(D,3D) matmul ----------
        qkv = jnp.dot(y.astype(cd), wqkv_ref[...],
                      preferred_element_type=jnp.float32) + bqkv_ref[...]
        qkv_c = qkv.astype(cd)

        # ---- causal mask, built once per grid step (shared by all heads) -
        row = lax.broadcasted_iota(jnp.int32, (S, S), 0)
        col = lax.broadcasted_iota(jnp.int32, (S, S), 1)
        causal = col > row

        # ---- per-head attention; results parked in VMEM scratch U --------
        # U[h*S + s, :] = values of head h for query position s  (f32)
        for h in range(H):
            q_h = qkv_c[:, h * hd:(h + 1) * hd]
            k_h = qkv_c[:, D + h * hd:D + (h + 1) * hd]
            v_h = qkv_c[:, 2 * D + h * hd:2 * D + (h + 1) * hd]
            s = lax.dot_general(q_h, k_h, (((1,), (1,)), ((), ())),
                                preferred_element_type=jnp.float32) * scale
            s = jnp.where(causal, -jnp.inf, s)
            m = jnp.max(s, axis=-1, keepdims=True)
            e = jnp.exp(s - m)
            denom = jnp.sum(e, axis=-1, keepdims=True)
            p = e * pl.reciprocal(denom, approx=approx_recip)
            u_ref[pl.ds(h * S, S), :] = jnp.dot(
                p.astype(cd), v_h, preferred_element_type=jnp.float32)

        # ---- output projection with the PyTorch reshape folded in --------
        # PyTorch does values.reshape(B, S, H*hd) on the (B, H, S, hd) tensor,
        # i.e. vals[s', m*hd + d] = U[s'*H + m, d].  Gather the needed rows
        # with strided sublane reads and do ONE (S,D)x(D,D) MXU matmul.
        vals = jnp.concatenate(
            [u_ref[pl.ds(m, S, stride=H), :] for m in range(H)], axis=-1)
        attn_out = jnp.dot(vals.astype(cd), wo_ref[...],
                           preferred_element_type=jnp.float32)

        # ---- residual + LN + FFN(relu) + residual + LN --------------------
        x = attn_out + bo_ref[...] + y
        y1 = layer_norm(x, g1_ref[...], be1_ref[...])

        h1 = jnp.dot(y1.astype(cd), w1_ref[...],
                     preferred_element_type=jnp.float32) + b1_ref[...]
        h1 = jnp.maximum(h1, 0.0)
        ff = jnp.dot(h1.astype(cd), w2_ref[...],
                     preferred_element_type=jnp.float32) + b2_ref[...]

        o_ref[0] = layer_norm(ff + y1, g3_ref[...], be3_ref[...])

    return kernel


def decoder_layer(y, kp, num_heads):
    """One fused decoder layer.  y: (B, S, D) f32, kp: kernel-layout params."""
    B, S, D = y.shape
    H = num_heads
    hd = D // H
    Fh = kp['w1'].shape[1]
    approx = kp['wqkv'].dtype == jnp.bfloat16

    kernel = _make_layer_kernel(S, D, H, hd, approx)

    return pl.pallas_call(
        kernel,
        out_shape=jax.ShapeDtypeStruct((B, S, D), jnp.float32),
        grid=(B,),
        in_specs=[
            pl.BlockSpec((1, S, D), lambda b: (b, 0, 0)),      # y
            pl.BlockSpec((D, 3 * D), lambda b: (0, 0)),        # wqkv (resident)
            pl.BlockSpec((1, 3 * D), lambda b: (0, 0)),        # bqkv
            pl.BlockSpec((D, D), lambda b: (0, 0)),            # wo
            pl.BlockSpec((1, D), lambda b: (0, 0)),            # bo
            pl.BlockSpec((1, D), lambda b: (0, 0)),            # gamma1
            pl.BlockSpec((1, D), lambda b: (0, 0)),            # beta1
            pl.BlockSpec((D, Fh), lambda b: (0, 0)),           # w1
            pl.BlockSpec((1, Fh), lambda b: (0, 0)),           # b1
            pl.BlockSpec((Fh, D), lambda b: (0, 0)),           # w2
            pl.BlockSpec((1, D), lambda b: (0, 0)),            # b2
            pl.BlockSpec((1, D), lambda b: (0, 0)),            # gamma3
            pl.BlockSpec((1, D), lambda b: (0, 0)),            # beta3
        ],
        out_specs=pl.BlockSpec((1, S, D), lambda b: (b, 0, 0)),
        scratch_shapes=[pltpu.VMEM((H * S, hd), jnp.float32)],  # per-head values
        compiler_params=pltpu.CompilerParams(
            dimension_semantics=("parallel",)),
    )(y, kp['wqkv'], kp['bqkv'], kp['wo'], kp['bo'], kp['g1'], kp['be1'],
      kp['w1'], kp['b1'], kp['w2'], kp['b2'], kp['g3'], kp['be3'])


def decoder_forward(y, layers, num_heads):
    for kp in layers:
        y = decoder_layer(y, kp, num_heads)
    return y


# ----------------------------------------------------------------------------
# Parameter init (PyTorch layout) and wrapper-side re-layout / dtype cast
# ----------------------------------------------------------------------------
def init_layer_params(key, d_model, ffn_hidden):
    ks = jax.random.split(key, 8)

    def lin(k, fan_in, shape):
        return jax.random.normal(k, shape, jnp.float32) / math.sqrt(fan_in)

    return dict(
        # nn.Linear(d_model, 3*d_model): column o = h*(3*hd) + part*hd + d
        wqkv=lin(ks[0], d_model, (d_model, 3 * d_model)),
        bqkv=0.01 * jax.random.normal(ks[1], (3 * d_model,), jnp.float32),
        wo=lin(ks[2], d_model, (d_model, d_model)),
        bo=0.01 * jax.random.normal(ks[3], (d_model,), jnp.float32),
        w1=lin(ks[4], d_model, (d_model, ffn_hidden)),
        b1=0.01 * jax.random.normal(ks[5], (ffn_hidden,), jnp.float32),
        w2=lin(ks[6], ffn_hidden, (ffn_hidden, d_model)),
        b2=0.01 * jax.random.normal(ks[7], (d_model,), jnp.float32),
        g1=jnp.ones((d_model,), jnp.float32),
        be1=jnp.zeros((d_model,), jnp.float32),
        g3=jnp.ones((d_model,), jnp.float32),
        be3=jnp.zeros((d_model,), jnp.float32),
    )


def prepare_layer_params(p, num_heads, compute_dtype):
    """Permute the fused QKV weight to [Q_0..Q_H | K_0..K_H | V_0..V_H] column
    layout and cast matmul weights to the compute dtype (bf16 for v6e/v7x)."""
    D = p['wqkv'].shape[0]
    H = num_heads
    hd = D // H
    # PyTorch column (h*3*hd + part*hd + d)  ->  kernel column (part*D + h*hd + d)
    w = p['wqkv'].reshape(D, H, 3, hd).transpose(0, 2, 1, 3).reshape(D, 3 * D)
    b = p['bqkv'].reshape(H, 3, hd).transpose(1, 0, 2).reshape(1, 3 * D)
    cd = compute_dtype
    return dict(
        wqkv=w.astype(cd), bqkv=b.astype(jnp.float32),
        wo=p['wo'].astype(cd), bo=p['bo'].reshape(1, -1).astype(jnp.float32),
        g1=p['g1'].reshape(1, -1), be1=p['be1'].reshape(1, -1),
        w1=p['w1'].astype(cd), b1=p['b1'].reshape(1, -1).astype(jnp.float32),
        w2=p['w2'].astype(cd), b2=p['b2'].reshape(1, -1).astype(jnp.float32),
        g3=p['g3'].reshape(1, -1), be3=p['be3'].reshape(1, -1),
    )


# ----------------------------------------------------------------------------
# Pure-JAX reference (mirrors the PyTorch forward exactly)
# ----------------------------------------------------------------------------
def ref_forward(y, params, num_heads):
    for p in params:
        B, S, D = y.shape
        hd = D // num_heads
        qkv = y @ p['wqkv'] + p['bqkv']
        qkv = qkv.reshape(B, S, num_heads, 3 * hd).transpose(0, 2, 1, 3)
        q, k, v = qkv[..., :hd], qkv[..., hd:2 * hd], qkv[..., 2 * hd:]
        s = jnp.einsum('bhse,bhte->bhst', q, k) / math.sqrt(hd)
        s = s + jnp.triu(jnp.full((S, S), -jnp.inf, jnp.float32), k=1)
        attn = jax.nn.softmax(s, axis=-1)
        # PyTorch: values.reshape(B, S, H*hd) directly on (B, H, S, hd)
        vals = jnp.einsum('bhst,bhte->bhse', attn, v).reshape(B, S, D)
        x = vals @ p['wo'] + p['bo'] + y

        def ln(z, g, b):
            mu = z.mean(-1, keepdims=True)
            var = ((z - mu) ** 2).mean(-1, keepdims=True)
            return (z - mu) / jnp.sqrt(var + 1e-5) * g + b

        y1 = ln(x, p['g1'], p['be1'])
        h = jax.nn.relu(y1 @ p['w1'] + p['b1'])
        ff = h @ p['w2'] + p['b2']
        y = ln(ff + y1, p['g3'], p['be3'])
    return y


if __name__ == "__main__":
    d_model, ffn_hidden, num_heads, num_layers = 32, 64, 4, 2
    B, S = 2, 8

    root = jax.random.PRNGKey(0)
    root, yk = jax.random.split(root)
    y = jax.random.normal(yk, (B, S, d_model), jnp.float32)
    layer_keys = jax.random.split(root, num_layers)
    params = [init_layer_params(k, d_model, ffn_hidden) for k in layer_keys]

    ref = ref_forward(y, params, num_heads)

    fwd = jax.jit(decoder_forward, static_argnums=(2,))

    # f32 MXU-operand path: primary correctness check.
    layers_f32 = [prepare_layer_params(p, num_heads, jnp.float32) for p in params]
    out_f32 = jax.block_until_ready(fwd(y, layers_f32, num_heads))
    assert out_f32.shape == (B, S, d_model)
    err32 = float(jnp.max(jnp.abs(out_f32 - ref)))
    assert bool(jnp.allclose(out_f32, ref, atol=1e-2, rtol=1e-2)), err32

    # bf16 MXU-operand path (perf mode for v6e/v7x): f32 accumulation, f32
    # softmax/LayerNorm; loose tolerance reflects bf16 rounding over 2 layers.
    layers_bf16 = [prepare_layer_params(p, num_heads, jnp.bfloat16) for p in params]
    out_bf16 = jax.block_until_ready(fwd(y, layers_bf16, num_heads))
    assert not bool(jnp.any(jnp.isnan(out_bf16)))
    err16 = float(jnp.max(jnp.abs(out_bf16 - ref)))
    assert err16 < 0.25, err16

    print("KERNEL_OK")
</pallas_src>

<mosaic_0001>
module attributes {stable_mosaic.version = 11 : i64} {
  func.func @kernel(%arg0: i32, %arg1: memref<1x8x32xf32, #tpu.memory_space<vmem>>, %arg2: memref<32x96xf32, #tpu.memory_space<vmem>>, %arg3: memref<1x96xf32, #tpu.memory_space<vmem>>, %arg4: memref<32x32xf32, #tpu.memory_space<vmem>>, %arg5: memref<1x32xf32, #tpu.memory_space<vmem>>, %arg6: memref<1x32xf32, #tpu.memory_space<vmem>>, %arg7: memref<1x32xf32, #tpu.memory_space<vmem>>, %arg8: memref<32x64xf32, #tpu.memory_space<vmem>>, %arg9: memref<1x64xf32, #tpu.memory_space<vmem>>, %arg10: memref<64x32xf32, #tpu.memory_space<vmem>>, %arg11: memref<1x32xf32, #tpu.memory_space<vmem>>, %arg12: memref<1x32xf32, #tpu.memory_space<vmem>>, %arg13: memref<1x32xf32, #tpu.memory_space<vmem>>, %arg14: memref<1x8x32xf32, #tpu.memory_space<vmem>>, %arg15: memref<32x8xf32, #tpu.memory_space<vmem>>) attributes {dimension_semantics = [#tpu.dimension_semantics<parallel>], iteration_bounds = array<i64: 2>, scalar_prefetch = 0 : i64, scratch_operands = 1 : i64, tpu.core_type = #tpu.core_type<tc>, window_params = [{transform_indices = @transform_0, window_bounds = array<i64: 1, 8, 32>}, {pipeline_mode = #tpu.pipeline_mode<synchronous>, transform_indices = @transform_1, window_bounds = array<i64: 32, 96>}, {pipeline_mode = #tpu.pipeline_mode<synchronous>, transform_indices = @transform_2, window_bounds = array<i64: 1, 96>}, {pipeline_mode = #tpu.pipeline_mode<synchronous>, transform_indices = @transform_3, window_bounds = array<i64: 32, 32>}, {pipeline_mode = #tpu.pipeline_mode<synchronous>, transform_indices = @transform_4, window_bounds = array<i64: 1, 32>}, {pipeline_mode = #tpu.pipeline_mode<synchronous>, transform_indices = @transform_5, window_bounds = array<i64: 1, 32>}, {pipeline_mode = #tpu.pipeline_mode<synchronous>, transform_indices = @transform_6, window_bounds = array<i64: 1, 32>}, {pipeline_mode = #tpu.pipeline_mode<synchronous>, transform_indices = @transform_7, window_bounds = array<i64: 32, 64>}, {pipeline_mode = #tpu.pipeline_mode<synchronous>, transform_indices = @transform_8, window_bounds = array<i64: 1, 64>}, {pipeline_mode = #tpu.pipeline_mode<synchronous>, transform_indices = @transform_9, window_bounds = array<i64: 64, 32>}, {pipeline_mode = #tpu.pipeline_mode<synchronous>, transform_indices = @transform_10, window_bounds = array<i64: 1, 32>}, {pipeline_mode = #tpu.pipeline_mode<synchronous>, transform_indices = @transform_11, window_bounds = array<i64: 1, 32>}, {pipeline_mode = #tpu.pipeline_mode<synchronous>, transform_indices = @transform_12, window_bounds = array<i64: 1, 32>}, {transform_indices = @transform_13, window_bounds = array<i64: 1, 8, 32>}]} {
    %c0 = arith.constant 0 : index
    %c0_0 = arith.constant 0 : index
    %c0_1 = arith.constant 0 : index
    %0 = vector.load %arg1[%c0, %c0_0, %c0_1] : memref<1x8x32xf32, #tpu.memory_space<vmem>>, vector<1x8x32xf32>
    %1 = vector.shape_cast %0 : vector<1x8x32xf32> to vector<8x32xf32>
    %c0_2 = arith.constant 0 : index
    %c0_3 = arith.constant 0 : index
    %2 = vector.load %arg2[%c0_2, %c0_3] : memref<32x96xf32, #tpu.memory_space<vmem>>, vector<32x96xf32>
    %cst = arith.constant dense<0.000000e+00> : vector<8x96xf32>
    %3 = tpu.matmul %1, %2, %cst {dimension_numbers = #tpu.dot_dimension_numbers<[1], [0], [0], [1], [0, 0, 1, 1], [], []>} : vector<8x32xf32>, vector<32x96xf32>, vector<8x96xf32> -> vector<8x96xf32>
    %c0_4 = arith.constant 0 : index
    %c0_5 = arith.constant 0 : index
    %4 = vector.load %arg3[%c0_4, %c0_5] : memref<1x96xf32, #tpu.memory_space<vmem>>, vector<1x96xf32>
    %5 = vector.broadcast %4 : vector<1x96xf32> to vector<8x96xf32>
    %6 = arith.addf %3, %5 : vector<8x96xf32>
    %7 = tpu.iota {dimensions = array<i32: 0>} : vector<8x8xi32>
    %8 = tpu.iota {dimensions = array<i32: 1>} : vector<8x8xi32>
    %9 = arith.cmpi sgt, %8, %7 : vector<8x8xi32>
    %10 = vector.extract_strided_slice %6 {offsets = [0, 0], sizes = [8, 8], strides = [1, 1]} : vector<8x96xf32> to vector<8x8xf32>
    %11 = vector.extract_strided_slice %6 {offsets = [0, 32], sizes = [8, 8], strides = [1, 1]} : vector<8x96xf32> to vector<8x8xf32>
    %12 = vector.extract_strided_slice %6 {offsets = [0, 64], sizes = [8, 8], strides = [1, 1]} : vector<8x96xf32> to vector<8x8xf32>
    %cst_6 = arith.constant dense<0.000000e+00> : vector<8x8xf32>
    %13 = tpu.matmul %10, %11, %cst_6 {dimension_numbers = #tpu.dot_dimension_numbers<[1], [1], [0], [0], [0, 0, 1, 0], [], []>} : vector<8x8xf32>, vector<8x8xf32>, vector<8x8xf32> -> vector<8x8xf32>
    %cst_7 = arith.constant 0.353553385 : f32
    %14 = vector.broadcast %cst_7 : f32 to vector<8x8xf32>
    %15 = arith.mulf %13, %14 : vector<8x8xf32>
    %cst_8 = arith.constant 0xFF800000 : f32
    %16 = vector.broadcast %cst_8 : f32 to vector<8x8xf32>
    %17 = arith.select %9, %16, %15 : vector<8x8xi1>, vector<8x8xf32>
    %cst_9 = arith.constant dense<0xFF800000> : vector<8xf32>
    %18 = vector.multi_reduction <maximumf>, %17, %cst_9 [1] : vector<8x8xf32> to vector<8xf32>
    %19 = vector.shape_cast %18 : vector<8xf32> to vector<8x1xf32>
    %20 = vector.broadcast %19 : vector<8x1xf32> to vector<8x8xf32>
    %21 = arith.subf %17, %20 : vector<8x8xf32>
    %22 = math.exp %21 : vector<8x8xf32>
    %cst_10 = arith.constant dense<0.000000e+00> : vector<8xf32>
    %23 = vector.multi_reduction <add>, %22, %cst_10 [1] : vector<8x8xf32> to vector<8xf32>
    %24 = vector.shape_cast %23 : vector<8xf32> to vector<8x1xf32>
    %25 = tpu.reciprocal %24 : vector<8x1xf32> -> vector<8x1xf32>
    %26 = vector.broadcast %25 : vector<8x1xf32> to vector<8x8xf32>
    %27 = arith.mulf %22, %26 : vector<8x8xf32>
    %cst_11 = arith.constant dense<0.000000e+00> : vector<8x8xf32>
    %28 = tpu.matmul %27, %12, %cst_11 {dimension_numbers = #tpu.dot_dimension_numbers<[1], [0], [0], [1], [0, 0, 1, 1], [], []>} : vector<8x8xf32>, vector<8x8xf32>, vector<8x8xf32> -> vector<8x8xf32>
    %c0_12 = arith.constant 0 : index
    %c0_13 = arith.constant 0 : index
    %29 = vector.load %arg15[%c0_12, %c0_13] : memref<32x8xf32, #tpu.memory_space<vmem>>, vector<8x8xf32>
    tpu.vector_store %arg15[%c0_12, %c0_13], %28 {strides = array<i32>} : memref<32x8xf32, #tpu.memory_space<vmem>>, vector<8x8xf32>,
    %30 = vector.extract_strided_slice %6 {offsets = [0, 8], sizes = [8, 8], strides = [1, 1]} : vector<8x96xf32> to vector<8x8xf32>
    %31 = vector.extract_strided_slice %6 {offsets = [0, 40], sizes = [8, 8], strides = [1, 1]} : vector<8x96xf32> to vector<8x8xf32>
    %32 = vector.extract_strided_slice %6 {offsets = [0, 72], sizes = [8, 8], strides = [1, 1]} : vector<8x96xf32> to vector<8x8xf32>
    %cst_14 = arith.constant dense<0.000000e+00> : vector<8x8xf32>
    %33 = tpu.matmul %30, %31, %cst_14 {dimension_numbers = #tpu.dot_dimension_numbers<[1], [1], [0], [0], [0, 0, 1, 0], [], []>} : vector<8x8xf32>, vector<8x8xf32>, vector<8x8xf32> -> vector<8x8xf32>
    %cst_15 = arith.constant 0.353553385 : f32
    %34 = vector.broadcast %cst_15 : f32 to vector<8x8xf32>
    %35 = arith.mulf %33, %34 : vector<8x8xf32>
    %cst_16 = arith.constant 0xFF800000 : f32
    %36 = vector.broadcast %cst_16 : f32 to vector<8x8xf32>
    %37 = arith.select %9, %36, %35 : vector<8x8xi1>, vector<8x8xf32>
    %cst_17 = arith.constant dense<0xFF800000> : vector<8xf32>
    %38 = vector.multi_reduction <maximumf>, %37, %cst_17 [1] : vector<8x8xf32> to vector<8xf32>
    %39 = vector.shape_cast %38 : vector<8xf32> to vector<8x1xf32>
    %40 = vector.broadcast %39 : vector<8x1xf32> to vector<8x8xf32>
    %41 = arith.subf %37, %40 : vector<8x8xf32>
    %42 = math.exp %41 : vector<8x8xf32>
    %cst_18 = arith.constant dense<0.000000e+00> : vector<8xf32>
    %43 = vector.multi_reduction <add>, %42, %cst_18 [1] : vector<8x8xf32> to vector<8xf32>
    %44 = vector.shape_cast %43 : vector<8xf32> to vector<8x1xf32>
    %45 = tpu.reciprocal %44 : vector<8x1xf32> -> vector<8x1xf32>
    %46 = vector.broadcast %45 : vector<8x1xf32> to vector<8x8xf32>
    %47 = arith.mulf %42, %46 : vector<8x8xf32>
    %cst_19 = arith.constant dense<0.000000e+00> : vector<8x8xf32>
    %48 = tpu.matmul %47, %32, %cst_19 {dimension_numbers = #tpu.dot_dimension_numbers<[1], [0], [0], [1], [0, 0, 1, 1], [], []>} : vector<8x8xf32>, vector<8x8xf32>, vector<8x8xf32> -> vector<8x8xf32>
    %c8 = arith.constant 8 : index
    %c0_20 = arith.constant 0 : index
    %49 = vector.load %arg15[%c8, %c0_20] : memref<32x8xf32, #tpu.memory_space<vmem>>, vector<8x8xf32>
    tpu.vector_store %arg15[%c8, %c0_20], %48 {strides = array<i32>} : memref<32x8xf32, #tpu.memory_space<vmem>>, vector<8x8xf32>,
    %50 = vector.extract_strided_slice %6 {offsets = [0, 16], sizes = [8, 8], strides = [1, 1]} : vector<8x96xf32> to vector<8x8xf32>
    %51 = vector.extract_strided_slice %6 {offsets = [0, 48], sizes = [8, 8], strides = [1, 1]} : vector<8x96xf32> to vector<8x8xf32>
    %52 = vector.extract_strided_slice %6 {offsets = [0, 80], sizes = [8, 8], strides = [1, 1]} : vector<8x96xf32> to vector<8x8xf32>
    %cst_21 = arith.constant dense<0.000000e+00> : vector<8x8xf32>
    %53 = tpu.matmul %50, %51, %cst_21 {dimension_numbers = #tpu.dot_dimension_numbers<[1], [1], [0], [0], [0, 0, 1, 0], [], []>} : vector<8x8xf32>, vector<8x8xf32>, vector<8x8xf32> -> vector<8x8xf32>
    %cst_22 = arith.constant 0.353553385 : f32
    %54 = vector.broadcast %cst_22 : f32 to vector<8x8xf32>
    %55 = arith.mulf %53, %54 : vector<8x8xf32>
    %cst_23 = arith.constant 0xFF800000 : f32
    %56 = vector.broadcast %cst_23 : f32 to vector<8x8xf32>
    %57 = arith.select %9, %56, %55 : vector<8x8xi1>, vector<8x8xf32>
    %cst_24 = arith.constant dense<0xFF800000> : vector<8xf32>
    %58 = vector.multi_reduction <maximumf>, %57, %cst_24 [1] : vector<8x8xf32> to vector<8xf32>
    %59 = vector.shape_cast %58 : vector<8xf32> to vector<8x1xf32>
    %60 = vector.broadcast %59 : vector<8x1xf32> to vector<8x8xf32>
    %61 = arith.subf %57, %60 : vector<8x8xf32>
    %62 = math.exp %61 : vector<8x8xf32>
    %cst_25 = arith.constant dense<0.000000e+00> : vector<8xf32>
    %63 = vector.multi_reduction <add>, %62, %cst_25 [1] : vector<8x8xf32> to vector<8xf32>
    %64 = vector.shape_cast %63 : vector<8xf32> to vector<8x1xf32>
    %65 = tpu.reciprocal %64 : vector<8x1xf32> -> vector<8x1xf32>
    %66 = vector.broadcast %65 : vector<8x1xf32> to vector<8x8xf32>
    %67 = arith.mulf %62, %66 : vector<8x8xf32>
    %cst_26 = arith.constant dense<0.000000e+00> : vector<8x8xf32>
    %68 = tpu.matmul %67, %52, %cst_26 {dimension_numbers = #tpu.dot_dimension_numbers<[1], [0], [0], [1], [0, 0, 1, 1], [], []>} : vector<8x8xf32>, vector<8x8xf32>, vector<8x8xf32> -> vector<8x8xf32>
    %c16 = arith.constant 16 : index
    %c0_27 = arith.constant 0 : index
    %69 = vector.load %arg15[%c16, %c0_27] : memref<32x8xf32, #tpu.memory_space<vmem>>, vector<8x8xf32>
    tpu.vector_store %arg15[%c16, %c0_27], %68 {strides = array<i32>} : memref<32x8xf32, #tpu.memory_space<vmem>>, vector<8x8xf32>,
    %70 = vector.extract_strided_slice %6 {offsets = [0, 24], sizes = [8, 8], strides = [1, 1]} : vector<8x96xf32> to vector<8x8xf32>
    %71 = vector.extract_strided_slice %6 {offsets = [0, 56], sizes = [8, 8], strides = [1, 1]} : vector<8x96xf32> to vector<8x8xf32>
    %72 = vector.extract_strided_slice %6 {offsets = [0, 88], sizes = [8, 8], strides = [1, 1]} : vector<8x96xf32> to vector<8x8xf32>
    %cst_28 = arith.constant dense<0.000000e+00> : vector<8x8xf32>
    %73 = tpu.matmul %70, %71, %cst_28 {dimension_numbers = #tpu.dot_dimension_numbers<[1], [1], [0], [0], [0, 0, 1, 0], [], []>} : vector<8x8xf32>, vector<8x8xf32>, vector<8x8xf32> -> vector<8x8xf32>
    %cst_29 = arith.constant 0.353553385 : f32
    %74 = vector.broadcast %cst_29 : f32 to vector<8x8xf32>
    %75 = arith.mulf %73, %74 : vector<8x8xf32>
    %cst_30 = arith.constant 0xFF800000 : f32
    %76 = vector.broadcast %cst_30 : f32 to vector<8x8xf32>
    %77 = arith.select %9, %76, %75 : vector<8x8xi1>, vector<8x8xf32>
    %cst_31 = arith.constant dense<0xFF800000> : vector<8xf32>
    %78 = vector.multi_reduction <maximumf>, %77, %cst_31 [1] : vector<8x8xf32> to vector<8xf32>
    %79 = vector.shape_cast %78 : vector<8xf32> to vector<8x1xf32>
    %80 = vector.broadcast %79 : vector<8x1xf32> to vector<8x8xf32>
    %81 = arith.subf %77, %80 : vector<8x8xf32>
    %82 = math.exp %81 : vector<8x8xf32>
    %cst_32 = arith.constant dense<0.000000e+00> : vector<8xf32>
    %83 = vector.multi_reduction <add>, %82, %cst_32 [1] : vector<8x8xf32> to vector<8xf32>
    %84 = vector.shape_cast %83 : vector<8xf32> to vector<8x1xf32>
    %85 = tpu.reciprocal %84 : vector<8x1xf32> -> vector<8x1xf32>
    %86 = vector.broadcast %85 : vector<8x1xf32> to vector<8x8xf32>
    %87 = arith.mulf %82, %86 : vector<8x8xf32>
    %cst_33 = arith.constant dense<0.000000e+00> : vector<8x8xf32>
    %88 = tpu.matmul %87, %72, %cst_33 {dimension_numbers = #tpu.dot_dimension_numbers<[1], [0], [0], [1], [0, 0, 1, 1], [], []>} : vector<8x8xf32>, vector<8x8xf32>, vector<8x8xf32> -> vector<8x8xf32>
    %c24 = arith.constant 24 : index
    %c0_34 = arith.constant 0 : index
    %89 = vector.load %arg15[%c24, %c0_34] : memref<32x8xf32, #tpu.memory_space<vmem>>, vector<8x8xf32>
    tpu.vector_store %arg15[%c24, %c0_34], %88 {strides = array<i32>} : memref<32x8xf32, #tpu.memory_space<vmem>>, vector<8x8xf32>,
    %c0_35 = arith.constant 0 : index
    %c0_36 = arith.constant 0 : index
    %90 = tpu.strided_load %arg15[%c0_35, %c0_36] {strides = array<i32: 4, 1>} : memref<32x8xf32, #tpu.memory_space<vmem>>, vector<8x8xf32>
    %c1 = arith.constant 1 : index
    %c0_37 = arith.constant 0 : index
    %91 = tpu.strided_load %arg15[%c1, %c0_37] {strides = array<i32: 4, 1>} : memref<32x8xf32, #tpu.memory_space<vmem>>, vector<8x8xf32>
    %c2 = arith.constant 2 : index
    %c0_38 = arith.constant 0 : index
    %92 = tpu.strided_load %arg15[%c2, %c0_38] {strides = array<i32: 4, 1>} : memref<32x8xf32, #tpu.memory_space<vmem>>, vector<8x8xf32>
    %c3 = arith.constant 3 : index
    %c0_39 = arith.constant 0 : index
    %93 = tpu.strided_load %arg15[%c3, %c0_39] {strides = array<i32: 4, 1>} : memref<32x8xf32, #tpu.memory_space<vmem>>, vector<8x8xf32>
    %94 = tpu.concatenate %90, %91, %92, %93 in 1 : vector<8x8xf32>, vector<8x8xf32>, vector<8x8xf32>, vector<8x8xf32> -> vector<8x32xf32>
    %c0_40 = arith.constant 0 : index
    %c0_41 = arith.constant 0 : index
    %95 = vector.load %arg4[%c0_40, %c0_41] : memref<32x32xf32, #tpu.memory_space<vmem>>, vector<32x32xf32>
    %cst_42 = arith.constant dense<0.000000e+00> : vector<8x32xf32>
    %96 = tpu.matmul %94, %95, %cst_42 {dimension_numbers = #tpu.dot_dimension_numbers<[1], [0], [0], [1], [0, 0, 1, 1], [], []>} : vector<8x32xf32>, vector<32x32xf32>, vector<8x32xf32> -> vector<8x32xf32>
    %c0_43 = arith.constant 0 : index
    %c0_44 = arith.constant 0 : index
    %97 = vector.load %arg5[%c0_43, %c0_44] : memref<1x32xf32, #tpu.memory_space<vmem>>, vector<1x32xf32>
    %98 = vector.broadcast %97 : vector<1x32xf32> to vector<8x32xf32>
    %99 = arith.addf %96, %98 : vector<8x32xf32>
    %100 = arith.addf %99, %1 : vector<8x32xf32>
    %c0_45 = arith.constant 0 : index
    %c0_46 = arith.constant 0 : index
    %101 = vector.load %arg6[%c0_45, %c0_46] : memref<1x32xf32, #tpu.memory_space<vmem>>, vector<1x32xf32>
    %c0_47 = arith.constant 0 : index
    %c0_48 = arith.constant 0 : index
    %102 = vector.load %arg7[%c0_47, %c0_48] : memref<1x32xf32, #tpu.memory_space<vmem>>, vector<1x32xf32>
    %cst_49 = arith.constant dense<0.000000e+00> : vector<8xf32>
    %103 = vector.multi_reduction <add>, %100, %cst_49 [1] : vector<8x32xf32> to vector<8xf32>
    %104 = vector.shape_cast %103 : vector<8xf32> to vector<8x1xf32>
    %cst_50 = arith.constant 3.200000e+01 : f32
    %105 = vector.broadcast %cst_50 : f32 to vector<8x1xf32>
    %106 = arith.divf %104, %105 : vector<8x1xf32>
    %107 = vector.broadcast %106 : vector<8x1xf32> to vector<8x32xf32>
    %108 = arith.subf %100, %107 : vector<8x32xf32>
    %109 = arith.mulf %108, %108 : vector<8x32xf32>
    %cst_51 = arith.constant dense<0.000000e+00> : vector<8xf32>
    %110 = vector.multi_reduction <add>, %109, %cst_51 [1] : vector<8x32xf32> to vector<8xf32>
    %111 = vector.shape_cast %110 : vector<8xf32> to vector<8x1xf32>
    %cst_52 = arith.constant 3.200000e+01 : f32
    %112 = vector.broadcast %cst_52 : f32 to vector<8x1xf32>
    %113 = arith.divf %111, %112 : vector<8x1xf32>
    %114 = vector.broadcast %106 : vector<8x1xf32> to vector<8x32xf32>
    %115 = arith.subf %100, %114 : vector<8x32xf32>
    %cst_53 = arith.constant 9.99999974E-6 : f32
    %116 = vector.broadcast %cst_53 : f32 to vector<8x1xf32>
    %117 = arith.addf %113, %116 : vector<8x1xf32>
    %118 = math.rsqrt %117 : vector<8x1xf32>
    %119 = vector.broadcast %118 : vector<8x1xf32> to vector<8x32xf32>
    %120 = arith.mulf %115, %119 : vector<8x32xf32>
    %121 = vector.broadcast %101 : vector<1x32xf32> to vector<8x32xf32>
    %122 = arith.mulf %120, %121 : vector<8x32xf32>
    %123 = vector.broadcast %102 : vector<1x32xf32> to vector<8x32xf32>
    %124 = arith.addf %122, %123 : vector<8x32xf32>
    %c0_54 = arith.constant 0 : index
    %c0_55 = arith.constant 0 : index
    %125 = vector.load %arg8[%c0_54, %c0_55] : memref<32x64xf32, #tpu.memory_space<vmem>>, vector<32x64xf32>
    %cst_56 = arith.constant dense<0.000000e+00> : vector<8x64xf32>
    %126 = tpu.matmul %124, %125, %cst_56 {dimension_numbers = #tpu.dot_dimension_numbers<[1], [0], [0], [1], [0, 0, 1, 1], [], []>} : vector<8x32xf32>, vector<32x64xf32>, vector<8x64xf32> -> vector<8x64xf32>
    %c0_57 = arith.constant 0 : index
    %c0_58 = arith.constant 0 : index
    %127 = vector.load %arg9[%c0_57, %c0_58] : memref<1x64xf32, #tpu.memory_space<vmem>>, vector<1x64xf32>
    %128 = vector.broadcast %127 : vector<1x64xf32> to vector<8x64xf32>
    %129 = arith.addf %126, %128 : vector<8x64xf32>
    %cst_59 = arith.constant 0.000000e+00 : f32
    %130 = vector.broadcast %cst_59 : f32 to vector<8x64xf32>
    %131 = arith.maximumf %129, %130 : vector<8x64xf32>
    %c0_60 = arith.constant 0 : index
    %c0_61 = arith.constant 0 : index
    %132 = vector.load %arg10[%c0_60, %c0_61] : memref<64x32xf32, #tpu.memory_space<vmem>>, vector<64x32xf32>
    %cst_62 = arith.constant dense<0.000000e+00> : vector<8x32xf32>
    %133 = tpu.matmul %131, %132, %cst_62 {dimension_numbers = #tpu.dot_dimension_numbers<[1], [0], [0], [1], [0, 0, 1, 1], [], []>} : vector<8x64xf32>, vector<64x32xf32>, vector<8x32xf32> -> vector<8x32xf32>
    %c0_63 = arith.constant 0 : index
    %c0_64 = arith.constant 0 : index
    %134 = vector.load %arg11[%c0_63, %c0_64] : memref<1x32xf32, #tpu.memory_space<vmem>>, vector<1x32xf32>
    %135 = vector.broadcast %134 : vector<1x32xf32> to vector<8x32xf32>
    %136 = arith.addf %133, %135 : vector<8x32xf32>
    %137 = arith.addf %136, %124 : vector<8x32xf32>
    %c0_65 = arith.constant 0 : index
    %c0_66 = arith.constant 0 : index
    %138 = vector.load %arg12[%c0_65, %c0_66] : memref<1x32xf32, #tpu.memory_space<vmem>>, vector<1x32xf32>
    %c0_67 = arith.constant 0 : index
    %c0_68 = arith.constant 0 : index
    %139 = vector.load %arg13[%c0_67, %c0_68] : memref<1x32xf32, #tpu.memory_space<vmem>>, vector<1x32xf32>
    %cst_69 = arith.constant dense<0.000000e+00> : vector<8xf32>
    %140 = vector.multi_reduction <add>, %137, %cst_69 [1] : vector<8x32xf32> to vector<8xf32>
    %141 = vector.shape_cast %140 : vector<8xf32> to vector<8x1xf32>
    %cst_70 = arith.constant 3.200000e+01 : f32
    %142 = vector.broadcast %cst_70 : f32 to vector<8x1xf32>
    %143 = arith.divf %141, %142 : vector<8x1xf32>
    %144 = vector.broadcast %143 : vector<8x1xf32> to vector<8x32xf32>
    %145 = arith.subf %137, %144 : vector<8x32xf32>
    %146 = arith.mulf %145, %145 : vector<8x32xf32>
    %cst_71 = arith.constant dense<0.000000e+00> : vector<8xf32>
    %147 = vector.multi_reduction <add>, %146, %cst_71 [1] : vector<8x32xf32> to vector<8xf32>
    %148 = vector.shape_cast %147 : vector<8xf32> to vector<8x1xf32>
    %cst_72 = arith.constant 3.200000e+01 : f32
    %149 = vector.broadcast %cst_72 : f32 to vector<8x1xf32>
    %150 = arith.divf %148, %149 : vector<8x1xf32>
    %151 = vector.broadcast %143 : vector<8x1xf32> to vector<8x32xf32>
    %152 = arith.subf %137, %151 : vector<8x32xf32>
    %cst_73 = arith.constant 9.99999974E-6 : f32
    %153 = vector.broadcast %cst_73 : f32 to vector<8x1xf32>
    %154 = arith.addf %150, %153 : vector<8x1xf32>
    %155 = math.rsqrt %154 : vector<8x1xf32>
    %156 = vector.broadcast %155 : vector<8x1xf32> to vector<8x32xf32>
    %157 = arith.mulf %152, %156 : vector<8x32xf32>
    %158 = vector.broadcast %138 : vector<1x32xf32> to vector<8x32xf32>
    %159 = arith.mulf %157, %158 : vector<8x32xf32>
    %160 = vector.broadcast %139 : vector<1x32xf32> to vector<8x32xf32>
    %161 = arith.addf %159, %160 : vector<8x32xf32>
    %c0_74 = arith.constant 0 : index
    %c0_75 = arith.constant 0 : index
    %c0_76 = arith.constant 0 : index
    %162 = vector.load %arg14[%c0_74, %c0_75, %c0_76] : memref<1x8x32xf32, #tpu.memory_space<vmem>>, vector<1x8x32xf32>
    %163 = vector.shape_cast %162 : vector<1x8x32xf32> to vector<8x32xf32>
    %164 = vector.shape_cast %161 : vector<8x32xf32> to vector<1x8x32xf32>
    tpu.vector_store %arg14[%c0_74, %c0_75, %c0_76], %164 {strides = array<i32>} : memref<1x8x32xf32, #tpu.memory_space<vmem>>, vector<1x8x32xf32>,
    return
  }
  func.func @transform_0(%arg0: i32) -> (i32, i32, i32) {
    %c0_i32 = arith.constant 0 : i32
    %c0_i32_0 = arith.constant 0 : i32
    %c0_i32_1 = arith.constant 0 : i32
    return %arg0, %c0_i32, %c0_i32_0 : i32, i32, i32
  }
  func.func @transform_1(%arg0: i32) -> (i32, i32) {
    %c0_i32 = arith.constant 0 : i32
    %c0_i32_0 = arith.constant 0 : i32
    %c0_i32_1 = arith.constant 0 : i32
    return %c0_i32, %c0_i32_0 : i32, i32
  }
  func.func @transform_2(%arg0: i32) -> (i32, i32) {
    %c0_i32 = arith.constant 0 : i32
    %c0_i32_0 = arith.constant 0 : i32
    %c0_i32_1 = arith.constant 0 : i32
    return %c0_i32, %c0_i32_0 : i32, i32
  }
  func.func @transform_3(%arg0: i32) -> (i32, i32) {
    %c0_i32 = arith.constant 0 : i32
    %c0_i32_0 = arith.constant 0 : i32
    %c0_i32_1 = arith.constant 0 : i32
    return %c0_i32, %c0_i32_0 : i32, i32
  }
  func.func @transform_4(%arg0: i32) -> (i32, i32) {
    %c0_i32 = arith.constant 0 : i32
    %c0_i32_0 = arith.constant 0 : i32
    %c0_i32_1 = arith.constant 0 : i32
    return %c0_i32, %c0_i32_0 : i32, i32
  }
  func.func @transform_5(%arg0: i32) -> (i32, i32) {
    %c0_i32 = arith.constant 0 : i32
    %c0_i32_0 = arith.constant 0 : i32
    %c0_i32_1 = arith.constant 0 : i32
    return %c0_i32, %c0_i32_0 : i32, i32
  }
  func.func @transform_6(%arg0: i32) -> (i32, i32) {
    %c0_i32 = arith.constant 0 : i32
    %c0_i32_0 = arith.constant 0 : i32
    %c0_i32_1 = arith.constant 0 : i32
    return %c0_i32, %c0_i32_0 : i32, i32
  }
  func.func @transform_7(%arg0: i32) -> (i32, i32) {
    %c0_i32 = arith.constant 0 : i32
    %c0_i32_0 = arith.constant 0 : i32
    %c0_i32_1 = arith.constant 0 : i32
    return %c0_i32, %c0_i32_0 : i32, i32
  }
  func.func @transform_8(%arg0: i32) -> (i32, i32) {
    %c0_i32 = arith.constant 0 : i32
    %c0_i32_0 = arith.constant 0 : i32
    %c0_i32_1 = arith.constant 0 : i32
    return %c0_i32, %c0_i32_0 : i32, i32
  }
  func.func @transform_9(%arg0: i32) -> (i32, i32) {
    %c0_i32 = arith.constant 0 : i32
    %c0_i32_0 = arith.constant 0 : i32
    %c0_i32_1 = arith.constant 0 : i32
    return %c0_i32, %c0_i32_0 : i32, i32
  }
  func.func @transform_10(%arg0: i32) -> (i32, i32) {
    %c0_i32 = arith.constant 0 : i32
    %c0_i32_0 = arith.constant 0 : i32
    %c0_i32_1 = arith.constant 0 : i32
    return %c0_i32, %c0_i32_0 : i32, i32
  }
  func.func @transform_11(%arg0: i32) -> (i32, i32) {
    %c0_i32 = arith.constant 0 : i32
    %c0_i32_0 = arith.constant 0 : i32
    %c0_i32_1 = arith.constant 0 : i32
    return %c0_i32, %c0_i32_0 : i32, i32
  }
  func.func @transform_12(%arg0: i32) -> (i32, i32) {
    %c0_i32 = arith.constant 0 : i32
    %c0_i32_0 = arith.constant 0 : i32
    %c0_i32_1 = arith.constant 0 : i32
    return %c0_i32, %c0_i32_0 : i32, i32
  }
  func.func @transform_13(%arg0: i32) -> (i32, i32, i32) {
    %c0_i32 = arith.constant 0 : i32
    %c0_i32_0 = arith.constant 0 : i32
    %c0_i32_1 = arith.constant 0 : i32
    return %arg0, %c0_i32, %c0_i32_0 : i32, i32, i32
  }
}

module attributes {stable_mosaic.version = 11 : i64} {
  func.func @kernel(%arg0: i32, %arg1: memref<1x8x32xf32, #tpu.memory_space<vmem>>, %arg2: memref<32x96xf32, #tpu.memory_space<vmem>>, %arg3: memref<1x96xf32, #tpu.memory_space<vmem>>, %arg4: memref<32x32xf32, #tpu.memory_space<vmem>>, %arg5: memref<1x32xf32, #tpu.memory_space<vmem>>, %arg6: memref<1x32xf32, #tpu.memory_space<vmem>>, %arg7: memref<1x32xf32, #tpu.memory_space<vmem>>, %arg8: memref<32x64xf32, #tpu.memory_space<vmem>>, %arg9: memref<1x64xf32, #tpu.memory_space<vmem>>, %arg10: memref<64x32xf32, #tpu.memory_space<vmem>>, %arg11: memref<1x32xf32, #tpu.memory_space<vmem>>, %arg12: memref<1x32xf32, #tpu.memory_space<vmem>>, %arg13: memref<1x32xf32, #tpu.memory_space<vmem>>, %arg14: memref<1x8x32xf32, #tpu.memory_space<vmem>>, %arg15: memref<32x8xf32, #tpu.memory_space<vmem>>) attributes {dimension_semantics = [#tpu.dimension_semantics<parallel>], iteration_bounds = array<i64: 2>, scalar_prefetch = 0 : i64, scratch_operands = 1 : i64, tpu.core_type = #tpu.core_type<tc>, window_params = [{transform_indices = @transform_0, window_bounds = array<i64: 1, 8, 32>}, {pipeline_mode = #tpu.pipeline_mode<synchronous>, transform_indices = @transform_1, window_bounds = array<i64: 32, 96>}, {pipeline_mode = #tpu.pipeline_mode<synchronous>, transform_indices = @transform_2, window_bounds = array<i64: 1, 96>}, {pipeline_mode = #tpu.pipeline_mode<synchronous>, transform_indices = @transform_3, window_bounds = array<i64: 32, 32>}, {pipeline_mode = #tpu.pipeline_mode<synchronous>, transform_indices = @transform_4, window_bounds = array<i64: 1, 32>}, {pipeline_mode = #tpu.pipeline_mode<synchronous>, transform_indices = @transform_5, window_bounds = array<i64: 1, 32>}, {pipeline_mode = #tpu.pipeline_mode<synchronous>, transform_indices = @transform_6, window_bounds = array<i64: 1, 32>}, {pipeline_mode = #tpu.pipeline_mode<synchronous>, transform_indices = @transform_7, window_bounds = array<i64: 32, 64>}, {pipeline_mode = #tpu.pipeline_mode<synchronous>, transform_indices = @transform_8, window_bounds = array<i64: 1, 64>}, {pipeline_mode = #tpu.pipeline_mode<synchronous>, transform_indices = @transform_9, window_bounds = array<i64: 64, 32>}, {pipeline_mode = #tpu.pipeline_mode<synchronous>, transform_indices = @transform_10, window_bounds = array<i64: 1, 32>}, {pipeline_mode = #tpu.pipeline_mode<synchronous>, transform_indices = @transform_11, window_bounds = array<i64: 1, 32>}, {pipeline_mode = #tpu.pipeline_mode<synchronous>, transform_indices = @transform_12, window_bounds = array<i64: 1, 32>}, {transform_indices = @transform_13, window_bounds = array<i64: 1, 8, 32>}]} {
    %c0 = arith.constant 0 : index
    %c0_0 = arith.constant 0 : index
    %c0_1 = arith.constant 0 : index
    %0 = vector.load %arg1[%c0, %c0_0, %c0_1] : memref<1x8x32xf32, #tpu.memory_space<vmem>>, vector<1x8x32xf32>
    %1 = vector.shape_cast %0 : vector<1x8x32xf32> to vector<8x32xf32>
    %c0_2 = arith.constant 0 : index
    %c0_3 = arith.constant 0 : index
    %2 = vector.load %arg2[%c0_2, %c0_3] : memref<32x96xf32, #tpu.memory_space<vmem>>, vector<32x96xf32>
    %cst = arith.constant dense<0.000000e+00> : vector<8x96xf32>
    %3 = tpu.matmul %1, %2, %cst {dimension_numbers = #tpu.dot_dimension_numbers<[1], [0], [0], [1], [0, 0, 1, 1], [], []>} : vector<8x32xf32>, vector<32x96xf32>, vector<8x96xf32> -> vector<8x96xf32>
    %c0_4 = arith.constant 0 : index
    %c0_5 = arith.constant 0 : index
    %4 = vector.load %arg3[%c0_4, %c0_5] : memref<1x96xf32, #tpu.memory_space<vmem>>, vector<1x96xf32>
    %5 = vector.broadcast %4 : vector<1x96xf32> to vector<8x96xf32>
    %6 = arith.addf %3, %5 : vector<8x96xf32>
    %7 = tpu.iota {dimensions = array<i32: 0>} : vector<8x8xi32>
    %8 = tpu.iota {dimensions = array<i32: 1>} : vector<8x8xi32>
    %9 = arith.cmpi sgt, %8, %7 : vector<8x8xi32>
    %10 = vector.extract_strided_slice %6 {offsets = [0, 0], sizes = [8, 8], strides = [1, 1]} : vector<8x96xf32> to vector<8x8xf32>
    %11 = vector.extract_strided_slice %6 {offsets = [0, 32], sizes = [8, 8], strides = [1, 1]} : vector<8x96xf32> to vector<8x8xf32>
    %12 = vector.extract_strided_slice %6 {offsets = [0, 64], sizes = [8, 8], strides = [1, 1]} : vector<8x96xf32> to vector<8x8xf32>
    %cst_6 = arith.constant dense<0.000000e+00> : vector<8x8xf32>
    %13 = tpu.matmul %10, %11, %cst_6 {dimension_numbers = #tpu.dot_dimension_numbers<[1], [1], [0], [0], [0, 0, 1, 0], [], []>} : vector<8x8xf32>, vector<8x8xf32>, vector<8x8xf32> -> vector<8x8xf32>
    %cst_7 = arith.constant 0.353553385 : f32
    %14 = vector.broadcast %cst_7 : f32 to vector<8x8xf32>
    %15 = arith.mulf %13, %14 : vector<8x8xf32>
    %cst_8 = arith.constant 0xFF800000 : f32
    %16 = vector.broadcast %cst_8 : f32 to vector<8x8xf32>
    %17 = arith.select %9, %16, %15 : vector<8x8xi1>, vector<8x8xf32>
    %cst_9 = arith.constant dense<0xFF800000> : vector<8xf32>
    %18 = vector.multi_reduction <maximumf>, %17, %cst_9 [1] : vector<8x8xf32> to vector<8xf32>
    %19 = vector.shape_cast %18 : vector<8xf32> to vector<8x1xf32>
    %20 = vector.broadcast %19 : vector<8x1xf32> to vector<8x8xf32>
    %21 = arith.subf %17, %20 : vector<8x8xf32>
    %22 = math.exp %21 : vector<8x8xf32>
    %cst_10 = arith.constant dense<0.000000e+00> : vector<8xf32>
    %23 = vector.multi_reduction <add>, %22, %cst_10 [1] : vector<8x8xf32> to vector<8xf32>
    %24 = vector.shape_cast %23 : vector<8xf32> to vector<8x1xf32>
    %25 = tpu.reciprocal %24 : vector<8x1xf32> -> vector<8x1xf32>
    %26 = vector.broadcast %25 : vector<8x1xf32> to vector<8x8xf32>
    %27 = arith.mulf %22, %26 : vector<8x8xf32>
    %cst_11 = arith.constant dense<0.000000e+00> : vector<8x8xf32>
    %28 = tpu.matmul %27, %12, %cst_11 {dimension_numbers = #tpu.dot_dimension_numbers<[1], [0], [0], [1], [0, 0, 1, 1], [], []>} : vector<8x8xf32>, vector<8x8xf32>, vector<8x8xf32> -> vector<8x8xf32>
    %c0_12 = arith.constant 0 : index
    %c0_13 = arith.constant 0 : index
    %29 = vector.load %arg15[%c0_12, %c0_13] : memref<32x8xf32, #tpu.memory_space<vmem>>, vector<8x8xf32>
    tpu.vector_store %arg15[%c0_12, %c0_13], %28 {strides = array<i32>} : memref<32x8xf32, #tpu.memory_space<vmem>>, vector<8x8xf32>,
    %30 = vector.extract_strided_slice %6 {offsets = [0, 8], sizes = [8, 8], strides = [1, 1]} : vector<8x96xf32> to vector<8x8xf32>
    %31 = vector.extract_strided_slice %6 {offsets = [0, 40], sizes = [8, 8], strides = [1, 1]} : vector<8x96xf32> to vector<8x8xf32>
    %32 = vector.extract_strided_slice %6 {offsets = [0, 72], sizes = [8, 8], strides = [1, 1]} : vector<8x96xf32> to vector<8x8xf32>
    %cst_14 = arith.constant dense<0.000000e+00> : vector<8x8xf32>
    %33 = tpu.matmul %30, %31, %cst_14 {dimension_numbers = #tpu.dot_dimension_numbers<[1], [1], [0], [0], [0, 0, 1, 0], [], []>} : vector<8x8xf32>, vector<8x8xf32>, vector<8x8xf32> -> vector<8x8xf32>
    %cst_15 = arith.constant 0.353553385 : f32
    %34 = vector.broadcast %cst_15 : f32 to vector<8x8xf32>
    %35 = arith.mulf %33, %34 : vector<8x8xf32>
    %cst_16 = arith.constant 0xFF800000 : f32
    %36 = vector.broadcast %cst_16 : f32 to vector<8x8xf32>
    %37 = arith.select %9, %36, %35 : vector<8x8xi1>, vector<8x8xf32>
    %cst_17 = arith.constant dense<0xFF800000> : vector<8xf32>
    %38 = vector.multi_reduction <maximumf>, %37, %cst_17 [1] : vector<8x8xf32> to vector<8xf32>
    %39 = vector.shape_cast %38 : vector<8xf32> to vector<8x1xf32>
    %40 = vector.broadcast %39 : vector<8x1xf32> to vector<8x8xf32>
    %41 = arith.subf %37, %40 : vector<8x8xf32>
    %42 = math.exp %41 : vector<8x8xf32>
    %cst_18 = arith.constant dense<0.000000e+00> : vector<8xf32>
    %43 = vector.multi_reduction <add>, %42, %cst_18 [1] : vector<8x8xf32> to vector<8xf32>
    %44 = vector.shape_cast %43 : vector<8xf32> to vector<8x1xf32>
    %45 = tpu.reciprocal %44 : vector<8x1xf32> -> vector<8x1xf32>
    %46 = vector.broadcast %45 : vector<8x1xf32> to vector<8x8xf32>
    %47 = arith.mulf %42, %46 : vector<8x8xf32>
    %cst_19 = arith.constant dense<0.000000e+00> : vector<8x8xf32>
    %48 = tpu.matmul %47, %32, %cst_19 {dimension_numbers = #tpu.dot_dimension_numbers<[1], [0], [0], [1], [0, 0, 1, 1], [], []>} : vector<8x8xf32>, vector<8x8xf32>, vector<8x8xf32> -> vector<8x8xf32>
    %c8 = arith.constant 8 : index
    %c0_20 = arith.constant 0 : index
    %49 = vector.load %arg15[%c8, %c0_20] : memref<32x8xf32, #tpu.memory_space<vmem>>, vector<8x8xf32>
    tpu.vector_store %arg15[%c8, %c0_20], %48 {strides = array<i32>} : memref<32x8xf32, #tpu.memory_space<vmem>>, vector<8x8xf32>,
    %50 = vector.extract_strided_slice %6 {offsets = [0, 16], sizes = [8, 8], strides = [1, 1]} : vector<8x96xf32> to vector<8x8xf32>
    %51 = vector.extract_strided_slice %6 {offsets = [0, 48], sizes = [8, 8], strides = [1, 1]} : vector<8x96xf32> to vector<8x8xf32>
    %52 = vector.extract_strided_slice %6 {offsets = [0, 80], sizes = [8, 8], strides = [1, 1]} : vector<8x96xf32> to vector<8x8xf32>
    %cst_21 = arith.constant dense<0.000000e+00> : vector<8x8xf32>
    %53 = tpu.matmul %50, %51, %cst_21 {dimension_numbers = #tpu.dot_dimension_numbers<[1], [1], [0], [0], [0, 0, 1, 0], [], []>} : vector<8x8xf32>, vector<8x8xf32>, vector<8x8xf32> -> vector<8x8xf32>
    %cst_22 = arith.constant 0.353553385 : f32
    %54 = vector.broadcast %cst_22 : f32 to vector<8x8xf32>
    %55 = arith.mulf %53, %54 : vector<8x8xf32>
    %cst_23 = arith.constant 0xFF800000 : f32
    %56 = vector.broadcast %cst_23 : f32 to vector<8x8xf32>
    %57 = arith.select %9, %56, %55 : vector<8x8xi1>, vector<8x8xf32>
    %cst_24 = arith.constant dense<0xFF800000> : vector<8xf32>
    %58 = vector.multi_reduction <maximumf>, %57, %cst_24 [1] : vector<8x8xf32> to vector<8xf32>
    %59 = vector.shape_cast %58 : vector<8xf32> to vector<8x1xf32>
    %60 = vector.broadcast %59 : vector<8x1xf32> to vector<8x8xf32>
    %61 = arith.subf %57, %60 : vector<8x8xf32>
    %62 = math.exp %61 : vector<8x8xf32>
    %cst_25 = arith.constant dense<0.000000e+00> : vector<8xf32>
    %63 = vector.multi_reduction <add>, %62, %cst_25 [1] : vector<8x8xf32> to vector<8xf32>
    %64 = vector.shape_cast %63 : vector<8xf32> to vector<8x1xf32>
    %65 = tpu.reciprocal %64 : vector<8x1xf32> -> vector<8x1xf32>
    %66 = vector.broadcast %65 : vector<8x1xf32> to vector<8x8xf32>
    %67 = arith.mulf %62, %66 : vector<8x8xf32>
    %cst_26 = arith.constant dense<0.000000e+00> : vector<8x8xf32>
    %68 = tpu.matmul %67, %52, %cst_26 {dimension_numbers = #tpu.dot_dimension_numbers<[1], [0], [0], [1], [0, 0, 1, 1], [], []>} : vector<8x8xf32>, vector<8x8xf32>, vector<8x8xf32> -> vector<8x8xf32>
    %c16 = arith.constant 16 : index
    %c0_27 = arith.constant 0 : index
    %69 = vector.load %arg15[%c16, %c0_27] : memref<32x8xf32, #tpu.memory_space<vmem>>, vector<8x8xf32>
    tpu.vector_store %arg15[%c16, %c0_27], %68 {strides = array<i32>} : memref<32x8xf32, #tpu.memory_space<vmem>>, vector<8x8xf32>,
    %70 = vector.extract_strided_slice %6 {offsets = [0, 24], sizes = [8, 8], strides = [1, 1]} : vector<8x96xf32> to vector<8x8xf32>
    %71 = vector.extract_strided_slice %6 {offsets = [0, 56], sizes = [8, 8], strides = [1, 1]} : vector<8x96xf32> to vector<8x8xf32>
    %72 = vector.extract_strided_slice %6 {offsets = [0, 88], sizes = [8, 8], strides = [1, 1]} : vector<8x96xf32> to vector<8x8xf32>
    %cst_28 = arith.constant dense<0.000000e+00> : vector<8x8xf32>
    %73 = tpu.matmul %70, %71, %cst_28 {dimension_numbers = #tpu.dot_dimension_numbers<[1], [1], [0], [0], [0, 0, 1, 0], [], []>} : vector<8x8xf32>, vector<8x8xf32>, vector<8x8xf32> -> vector<8x8xf32>
    %cst_29 = arith.constant 0.353553385 : f32
    %74 = vector.broadcast %cst_29 : f32 to vector<8x8xf32>
    %75 = arith.mulf %73, %74 : vector<8x8xf32>
    %cst_30 = arith.constant 0xFF800000 : f32
    %76 = vector.broadcast %cst_30 : f32 to vector<8x8xf32>
    %77 = arith.select %9, %76, %75 : vector<8x8xi1>, vector<8x8xf32>
    %cst_31 = arith.constant dense<0xFF800000> : vector<8xf32>
    %78 = vector.multi_reduction <maximumf>, %77, %cst_31 [1] : vector<8x8xf32> to vector<8xf32>
    %79 = vector.shape_cast %78 : vector<8xf32> to vector<8x1xf32>
    %80 = vector.broadcast %79 : vector<8x1xf32> to vector<8x8xf32>
    %81 = arith.subf %77, %80 : vector<8x8xf32>
    %82 = math.exp %81 : vector<8x8xf32>
    %cst_32 = arith.constant dense<0.000000e+00> : vector<8xf32>
    %83 = vector.multi_reduction <add>, %82, %cst_32 [1] : vector<8x8xf32> to vector<8xf32>
    %84 = vector.shape_cast %83 : vector<8xf32> to vector<8x1xf32>
    %85 = tpu.reciprocal %84 : vector<8x1xf32> -> vector<8x1xf32>
    %86 = vector.broadcast %85 : vector<8x1xf32> to vector<8x8xf32>
    %87 = arith.mulf %82, %86 : vector<8x8xf32>
    %cst_33 = arith.constant dense<0.000000e+00> : vector<8x8xf32>
    %88 = tpu.matmul %87, %72, %cst_33 {dimension_numbers = #tpu.dot_dimension_numbers<[1], [0], [0], [1], [0, 0, 1, 1], [], []>} : vector<8x8xf32>, vector<8x8xf32>, vector<8x8xf32> -> vector<8x8xf32>
    %c24 = arith.constant 24 : index
    %c0_34 = arith.constant 0 : index
    %89 = vector.load %arg15[%c24, %c0_34] : memref<32x8xf32, #tpu.memory_space<vmem>>, vector<8x8xf32>
    tpu.vector_store %arg15[%c24, %c0_34], %88 {strides = array<i32>} : memref<32x8xf32, #tpu.memory_space<vmem>>, vector<8x8xf32>,
    %c0_35 = arith.constant 0 : index
    %c0_36 = arith.constant 0 : index
    %90 = tpu.strided_load %arg15[%c0_35, %c0_36] {strides = array<i32: 4, 1>} : memref<32x8xf32, #tpu.memory_space<vmem>>, vector<8x8xf32>
    %c1 = arith.constant 1 : index
    %c0_37 = arith.constant 0 : index
    %91 = tpu.strided_load %arg15[%c1, %c0_37] {strides = array<i32: 4, 1>} : memref<32x8xf32, #tpu.memory_space<vmem>>, vector<8x8xf32>
    %c2 = arith.constant 2 : index
    %c0_38 = arith.constant 0 : index
    %92 = tpu.strided_load %arg15[%c2, %c0_38] {strides = array<i32: 4, 1>} : memref<32x8xf32, #tpu.memory_space<vmem>>, vector<8x8xf32>
    %c3 = arith.constant 3 : index
    %c0_39 = arith.constant 0 : index
    %93 = tpu.strided_load %arg15[%c3, %c0_39] {strides = array<i32: 4, 1>} : memref<32x8xf32, #tpu.memory_space<vmem>>, vector<8x8xf32>
    %94 = tpu.concatenate %90, %91, %92, %93 in 1 : vector<8x8xf32>, vector<8x8xf32>, vector<8x8xf32>, vector<8x8xf32> -> vector<8x32xf32>
    %c0_40 = arith.constant 0 : index
    %c0_41 = arith.constant 0 : index
    %95 = vector.load %arg4[%c0_40, %c0_41] : memref<32x32xf32, #tpu.memory_space<vmem>>, vector<32x32xf32>
    %cst_42 = arith.constant dense<0.000000e+00> : vector<8x32xf32>
    %96 = tpu.matmul %94, %95, %cst_42 {dimension_numbers = #tpu.dot_dimension_numbers<[1], [0], [0], [1], [0, 0, 1, 1], [], []>} : vector<8x32xf32>, vector<32x32xf32>, vector<8x32xf32> -> vector<8x32xf32>
    %c0_43 = arith.constant 0 : index
    %c0_44 = arith.constant 0 : index
    %97 = vector.load %arg5[%c0_43, %c0_44] : memref<1x32xf32, #tpu.memory_space<vmem>>, vector<1x32xf32>
    %98 = vector.broadcast %97 : vector<1x32xf32> to vector<8x32xf32>
    %99 = arith.addf %96, %98 : vector<8x32xf32>
    %100 = arith.addf %99, %1 : vector<8x32xf32>
    %c0_45 = arith.constant 0 : index
    %c0_46 = arith.constant 0 : index
    %101 = vector.load %arg6[%c0_45, %c0_46] : memref<1x32xf32, #tpu.memory_space<vmem>>, vector<1x32xf32>
    %c0_47 = arith.constant 0 : index
    %c0_48 = arith.constant 0 : index
    %102 = vector.load %arg7[%c0_47, %c0_48] : memref<1x32xf32, #tpu.memory_space<vmem>>, vector<1x32xf32>
    %cst_49 = arith.constant dense<0.000000e+00> : vector<8xf32>
    %103 = vector.multi_reduction <add>, %100, %cst_49 [1] : vector<8x32xf32> to vector<8xf32>
    %104 = vector.shape_cast %103 : vector<8xf32> to vector<8x1xf32>
    %cst_50 = arith.constant 3.200000e+01 : f32
    %105 = vector.broadcast %cst_50 : f32 to vector<8x1xf32>
    %106 = arith.divf %104, %105 : vector<8x1xf32>
    %107 = vector.broadcast %106 : vector<8x1xf32> to vector<8x32xf32>
    %108 = arith.subf %100, %107 : vector<8x32xf32>
    %109 = arith.mulf %108, %108 : vector<8x32xf32>
    %cst_51 = arith.constant dense<0.000000e+00> : vector<8xf32>
    %110 = vector.multi_reduction <add>, %109, %cst_51 [1] : vector<8x32xf32> to vector<8xf32>
    %111 = vector.shape_cast %110 : vector<8xf32> to vector<8x1xf32>
    %cst_52 = arith.constant 3.200000e+01 : f32
    %112 = vector.broadcast %cst_52 : f32 to vector<8x1xf32>
    %113 = arith.divf %111, %112 : vector<8x1xf32>
    %114 = vector.broadcast %106 : vector<8x1xf32> to vector<8x32xf32>
    %115 = arith.subf %100, %114 : vector<8x32xf32>
    %cst_53 = arith.constant 9.99999974E-6 : f32
    %116 = vector.broadcast %cst_53 : f32 to vector<8x1xf32>
    %117 = arith.addf %113, %116 : vector<8x1xf32>
    %118 = math.rsqrt %117 : vector<8x1xf32>
    %119 = vector.broadcast %118 : vector<8x1xf32> to vector<8x32xf32>
    %120 = arith.mulf %115, %119 : vector<8x32xf32>
    %121 = vector.broadcast %101 : vector<1x32xf32> to vector<8x32xf32>
    %122 = arith.mulf %120, %121 : vector<8x32xf32>
    %123 = vector.broadcast %102 : vector<1x32xf32> to vector<8x32xf32>
    %124 = arith.addf %122, %123 : vector<8x32xf32>
    %c0_54 = arith.constant 0 : index
    %c0_55 = arith.constant 0 : index
    %125 = vector.load %arg8[%c0_54, %c0_55] : memref<32x64xf32, #tpu.memory_space<vmem>>, vector<32x64xf32>
    %cst_56 = arith.constant dense<0.000000e+00> : vector<8x64xf32>
    %126 = tpu.matmul %124, %125, %cst_56 {dimension_numbers = #tpu.dot_dimension_numbers<[1], [0], [0], [1], [0, 0, 1, 1], [], []>} : vector<8x32xf32>, vector<32x64xf32>, vector<8x64xf32> -> vector<8x64xf32>
    %c0_57 = arith.constant 0 : index
    %c0_58 = arith.constant 0 : index
    %127 = vector.load %arg9[%c0_57, %c0_58] : memref<1x64xf32, #tpu.memory_space<vmem>>, vector<1x64xf32>
    %128 = vector.broadcast %127 : vector<1x64xf32> to vector<8x64xf32>
    %129 = arith.addf %126, %128 : vector<8x64xf32>
    %cst_59 = arith.constant 0.000000e+00 : f32
    %130 = vector.broadcast %cst_59 : f32 to vector<8x64xf32>
    %131 = arith.maximumf %129, %130 : vector<8x64xf32>
    %c0_60 = arith.constant 0 : index
    %c0_61 = arith.constant 0 : index
    %132 = vector.load %arg10[%c0_60, %c0_61] : memref<64x32xf32, #tpu.memory_space<vmem>>, vector<64x32xf32>
    %cst_62 = arith.constant dense<0.000000e+00> : vector<8x32xf32>
    %133 = tpu.matmul %131, %132, %cst_62 {dimension_numbers = #tpu.dot_dimension_numbers<[1], [0], [0], [1], [0, 0, 1, 1], [], []>} : vector<8x64xf32>, vector<64x32xf32>, vector<8x32xf32> -> vector<8x32xf32>
    %c0_63 = arith.constant 0 : index
    %c0_64 = arith.constant 0 : index
    %134 = vector.load %arg11[%c0_63, %c0_64] : memref<1x32xf32, #tpu.memory_space<vmem>>, vector<1x32xf32>
    %135 = vector.broadcast %134 : vector<1x32xf32> to vector<8x32xf32>
    %136 = arith.addf %133, %135 : vector<8x32xf32>
    %137 = arith.addf %136, %124 : vector<8x32xf32>
    %c0_65 = arith.constant 0 : index
    %c0_66 = arith.constant 0 : index
    %138 = vector.load %arg12[%c0_65, %c0_66] : memref<1x32xf32, #tpu.memory_space<vmem>>, vector<1x32xf32>
    %c0_67 = arith.constant 0 : index
    %c0_68 = arith.constant 0 : index
    %139 = vector.load %arg13[%c0_67, %c0_68] : memref<1x32xf32, #tpu.memory_space<vmem>>, vector<1x32xf32>
    %cst_69 = arith.constant dense<0.000000e+00> : vector<8xf32>
    %140 = vector.multi_reduction <add>, %137, %cst_69 [1] : vector<8x32xf32> to vector<8xf32>
    %141 = vector.shape_cast %140 : vector<8xf32> to vector<8x1xf32>
    %cst_70 = arith.constant 3.200000e+01 : f32
    %142 = vector.broadcast %cst_70 : f32 to vector<8x1xf32>
    %143 = arith.divf %141, %142 : vector<8x1xf32>
    %144 = vector.broadcast %143 : vector<8x1xf32> to vector<8x32xf32>
    %145 = arith.subf %137, %144 : vector<8x32xf32>
    %146 = arith.mulf %145, %145 : vector<8x32xf32>
    %cst_71 = arith.constant dense<0.000000e+00> : vector<8xf32>
    %147 = vector.multi_reduction <add>, %146, %cst_71 [1] : vector<8x32xf32> to vector<8xf32>
    %148 = vector.shape_cast %147 : vector<8xf32> to vector<8x1xf32>
    %cst_72 = arith.constant 3.200000e+01 : f32
    %149 = vector.broadcast %cst_72 : f32 to vector<8x1xf32>
    %150 = arith.divf %148, %149 : vector<8x1xf32>
    %151 = vector.broadcast %143 : vector<8x1xf32> to vector<8x32xf32>
    %152 = arith.subf %137, %151 : vector<8x32xf32>
    %cst_73 = arith.constant 9.99999974E-6 : f32
    %153 = vector.broadcast %cst_73 : f32 to vector<8x1xf32>
    %154 = arith.addf %150, %153 : vector<8x1xf32>
    %155 = math.rsqrt %154 : vector<8x1xf32>
    %156 = vector.broadcast %155 : vector<8x1xf32> to vector<8x32xf32>
    %157 = arith.mulf %152, %156 : vector<8x32xf32>
    %158 = vector.broadcast %138 : vector<1x32xf32> to vector<8x32xf32>
    %159 = arith.mulf %157, %158 : vector<8x32xf32>
    %160 = vector.broadcast %139 : vector<1x32xf32> to vector<8x32xf32>
    %161 = arith.addf %159, %160 : vector<8x32xf32>
    %c0_74 = arith.constant 0 : index
    %c0_75 = arith.constant 0 : index
    %c0_76 = arith.constant 0 : index
    %162 = vector.load %arg14[%c0_74, %c0_75, %c0_76] : memref<1x8x32xf32, #tpu.memory_space<vmem>>, vector<1x8x32xf32>
    %163 = vector.shape_cast %162 : vector<1x8x32xf32> to vector<8x32xf32>
    %164 = vector.shape_cast %161 : vector<8x32xf32> to vector<1x8x32xf32>
    tpu.vector_store %arg14[%c0_74, %c0_75, %c0_76], %164 {strides = array<i32>} : memref<1x8x32xf32, #tpu.memory_space<vmem>>, vector<1x8x32xf32>,
    return
  }
  func.func @transform_0(%arg0: i32) -> (i32, i32, i32) {
    %c0_i32 = arith.constant 0 : i32
    %c0_i32_0 = arith.constant 0 : i32
    %c0_i32_1 = arith.constant 0 : i32
    return %arg0, %c0_i32, %c0_i32_0 : i32, i32, i32
  }
  func.func @transform_1(%arg0: i32) -> (i32, i32) {
    %c0_i32 = arith.constant 0 : i32
    %c0_i32_0 = arith.constant 0 : i32
    %c0_i32_1 = arith.constant 0 : i32
    return %c0_i32, %c0_i32_0 : i32, i32
  }
  func.func @transform_2(%arg0: i32) -> (i32, i32) {
    %c0_i32 = arith.constant 0 : i32
    %c0_i32_0 = arith.constant 0 : i32
    %c0_i32_1 = arith.constant 0 : i32
    return %c0_i32, %c0_i32_0 : i32, i32
  }
  func.func @transform_3(%arg0: i32) -> (i32, i32) {
    %c0_i32 = arith.constant 0 : i32
    %c0_i32_0 = arith.constant 0 : i32
    %c0_i32_1 = arith.constant 0 : i32
    return %c0_i32, %c0_i32_0 : i32, i32
  }
  func.func @transform_4(%arg0: i32) -> (i32, i32) {
    %c0_i32 = arith.constant 0 : i32
    %c0_i32_0 = arith.constant 0 : i32
    %c0_i32_1 = arith.constant 0 : i32
    return %c0_i32, %c0_i32_0 : i32, i32
  }
  func.func @transform_5(%arg0: i32) -> (i32, i32) {
    %c0_i32 = arith.constant 0 : i32
    %c0_i32_0 = arith.constant 0 : i32
    %c0_i32_1 = arith.constant 0 : i32
    return %c0_i32, %c0_i32_0 : i32, i32
  }
  func.func @transform_6(%arg0: i32) -> (i32, i32) {
    %c0_i32 = arith.constant 0 : i32
    %c0_i32_0 = arith.constant 0 : i32
    %c0_i32_1 = arith.constant 0 : i32
    return %c0_i32, %c0_i32_0 : i32, i32
  }
  func.func @transform_7(%arg0: i32) -> (i32, i32) {
    %c0_i32 = arith.constant 0 : i32
    %c0_i32_0 = arith.constant 0 : i32
    %c0_i32_1 = arith.constant 0 : i32
    return %c0_i32, %c0_i32_0 : i32, i32
  }
  func.func @transform_8(%arg0: i32) -> (i32, i32) {
    %c0_i32 = arith.constant 0 : i32
    %c0_i32_0 = arith.constant 0 : i32
    %c0_i32_1 = arith.constant 0 : i32
    return %c0_i32, %c0_i32_0 : i32, i32
  }
  func.func @transform_9(%arg0: i32) -> (i32, i32) {
    %c0_i32 = arith.constant 0 : i32
    %c0_i32_0 = arith.constant 0 : i32
    %c0_i32_1 = arith.constant 0 : i32
    return %c0_i32, %c0_i32_0 : i32, i32
  }
  func.func @transform_10(%arg0: i32) -> (i32, i32) {
    %c0_i32 = arith.constant 0 : i32
    %c0_i32_0 = arith.constant 0 : i32
    %c0_i32_1 = arith.constant 0 : i32
    return %c0_i32, %c0_i32_0 : i32, i32
  }
  func.func @transform_11(%arg0: i32) -> (i32, i32) {
    %c0_i32 = arith.constant 0 : i32
    %c0_i32_0 = arith.constant 0 : i32
    %c0_i32_1 = arith.constant 0 : i32
    return %c0_i32, %c0_i32_0 : i32, i32
  }
  func.func @transform_12(%arg0: i32) -> (i32, i32) {
    %c0_i32 = arith.constant 0 : i32
    %c0_i32_0 = arith.constant 0 : i32
    %c0_i32_1 = arith.constant 0 : i32
    return %c0_i32, %c0_i32_0 : i32, i32
  }
  func.func @transform_13(%arg0: i32) -> (i32, i32, i32) {
    %c0_i32 = arith.constant 0 : i32
    %c0_i32_0 = arith.constant 0 : i32
    %c0_i32_1 = arith.constant 0 : i32
    return %arg0, %c0_i32, %c0_i32_0 : i32, i32, i32
  }
}

</mosaic_0001>

<bundles_post_ra>
// kernel: decoder_forward.2
= control target key start
LH: loop header
LB: loop body
LE: loop exit
PB: predicated region body
PF: predicated region fallthrough
CT: control target
= control target key end

     0   :  { %s2628_s0 = inlined_call_operand.hbm [shape: f32[2,8,32], index: 0, kind: input, shape index: {}]   ;;  %s2629_s1 = inlined_call_operand.vmem [shape: f32[32,96], index: 1, kind: input, shape index: {}]   ;;  %s2630_s2 = inlined_call_operand.vmem [shape: f32[1,96], index: 2, kind: input, shape index: {}]   ;;  %s2631_s3 = inlined_call_operand.vmem [shape: f32[32,32], index: 3, kind: input, shape index: {}]   ;;  %s2632_s4 = inlined_call_operand.vmem [shape: f32[1,32], index: 4, kind: input, shape index: {}]   ;;  %s2633_s5 = inlined_call_operand.vmem [shape: f32[1,32], index: 5, kind: input, shape index: {}]   ;;  %s2634_s6 = inlined_call_operand.vmem [shape: f32[1,32], index: 6, kind: input, shape index: {}]   ;;  %s2635_s7 = inlined_call_operand.vmem [shape: f32[32,64], index: 7, kind: input, shape index: {}]   ;;  %s2636_s8 = inlined_call_operand.hbm [shape: f32[1,64], index: 8, kind: input, shape index: {}]   ;;  %s2637_s9 = inlined_call_operand.vmem [shape: f32[64,32], index: 9, kind: input, shape index: {}]   ;;  %s2638_s10 = inlined_call_operand.vmem [shape: f32[1,32], index: 10, kind: input, shape index: {}]   ;;  %s2639_s11 = inlined_call_operand.hbm [shape: f32[1,32], index: 11, kind: input, shape index: {}]   ;;  %s2640_s12 = inlined_call_operand.hbm [shape: f32[1,32], index: 12, kind: input, shape index: {}]   ;;  %s2641_s13 = inlined_call_operand.vmem [shape: f32[2,8,32], index: 13, kind: output, shape index: {}]  }
   0x1   :  { %2645 = sst [smem:[#allocation13_spill]] %s2634_s6 }
   0x2   :  { %2646 = sst [smem:[#allocation14_spill]] %s2638_s10 }
   0x3   :  { %2647 = sst [smem:[#allocation15_spill]] %s2641_s13 }
   0x4   :  { %18 = vsyncpa [#allocation4], 0 }
   0x5   :  { %20 = vsyncpa [#allocation4 + $0x1], 0 }
   0x6   :  { %21 = vsyncpa [#allocation6], 0 }
   0x7   :  { %22 = vsyncpa [#allocation9], 0  ;;  %s2253_s25 = smov 0   ;;  %s2255_s26 = smov 0  }
   0x8   :  { %s2257_s27 = smov 0   ;;  %s2259_s28 = smov 0  }
   0x9 LB: > { %s2272_s29 = sadd.s32 4294967295, %s2160_s28   ;;  %p48_p0 = scmp.ne.s32.totalorder %s2152_s26, %s2148_s25  ;;  %s2160_s28 = sphi %s2259_s28, %s2665_s28   ;;  %s2156_s27 = sphi %s2257_s27, %s2664_s27   ;;  %s2152_s26 = sphi %s2255_s26, %s2663_s26   ;;  %s2148_s25 = sphi %s2253_s25, %s2662_s25  }
   0xa   : > { %p2642_p1 = scmp.eq.s32.totalorder %s2272_s29, 0  ;;  %p1696_p2 = scmp.ge.s32.totalorder %s2160_s28, 1 }
   0xb   : > { %p337_p3 = scmp.lt.s32.totalorder %s2160_s28, 3  ;;  %s2162_s15 = smov [#allocation5]  }
   0xc   : > { %p2280_p4 = por %p2642_p1, %p48_p0  ;;  %s371_s16 = sshll.u32 %s2162_s15, 4  ;;  %s372_s16 = int_to_ptr.vmem [resolvable:$true] %s371_s16 }
   0xd   : > { %p2284_p5 = pnand %p1696_p2, %p337_p3  ;;  %s2163_s17 = smov [#allocation7]  }
   0xe   : > { %s2648_s30 = scalar_select %p2280_p4, 1, 0 }
   0xf   : > { %s2649_s14 = scalar_select %p2284_p5, 1, 0 }
  0x10   : > { %p1911_p6 = pneg %p2284_p5  ;;  %s388_s18 = sshll.u32 %s2163_s17, 4  ;;  %s2296_s18 = int_to_ptr.vmem [resolvable:$true] %s388_s18 }
  0x11   : > { %s2164_s20 = smov [#allocation8]   ;;  %s2004_s24 = scalar_lea.hbm %s2636_s8, 16 }
  0x12   : > { %p2292_p7 = pnand %p1911_p6, %p2642_p1  ;;  %s399_s21 = sshll.u32 %s2164_s20, 4  ;;  %s2298_s21 = int_to_ptr.vmem [resolvable:$true] %s399_s21 }
  0x13   : > { %p2005_p8 = scmp.ne.s32.totalorder %s2636_s8, %s2004_s24  ;;  %p2011_p12 = scmp.lt.u32.totalorder %s2004_s24, %s2636_s8 }
  0x14   : > { %p2308_p9 = pneg %p2292_p7 }
  0x16   : > { %p2007_p10 = pnand %p2308_p9, %p2005_p8 }
  0x18   : > { %p2008_p11 = pneg %p2007_p10 }
  0x1a   : > { %p2013_p13 = pnand %p2011_p12, %p2008_p11 }
  0x1c   : > { %2016 = shalt.err (!%p2013_p13)
}
  0x1d   : > { %s2017_s22 = scalar_lea.vmem %s372_s16, 16  ;;  %s2024_s23 = scalar_lea.vmem %s372_s16, 32 }
  0x1e   : > { %p2018_p0 = scmp.ne.s32.totalorder %s372_s16, %s2017_s22  ;;  %p2025_p6 = scmp.lt.s32.totalorder %s372_s16, %s372_s16 }
  0x1f   : > { %p2026_p1 = scmp.lt.s32.totalorder %s2024_s23, %s2017_s22 }
  0x20   : > { %p2020_p2 = pnand %p2018_p0, %p2308_p9 }
  0x21   : > { %p2027_p4 = por %p2026_p1, %p2025_p6 }
  0x22   : > { %p2021_p3 = pneg %p2020_p2 }
  0x24   : > { %p2028_p5 = pnand %p2027_p4, %p2021_p3 }
  0x26   : > { %2031 = shalt.err (!%p2028_p5)
}
  0x27   : > { %1914 = dma.hbm_to_vmem [thread:$0]  (!%p2292_p7), %s2636_s8, 16, %s372_s16, [#allocation6]  }
  0x28   : > { %s2032_s20 = scalar_lea.hbm %s2639_s11, 16 }
  0x29   : > { %p2033_p8 = scmp.ne.s32.totalorder %s2639_s11, %s2032_s20  ;;  %p2039_p4 = scmp.lt.u32.totalorder %s2032_s20, %s2639_s11 }
  0x2b   : > { %p2035_p10 = pnand %p2033_p8, %p2308_p9 }
  0x2d   : > { %p2036_p1 = pneg %p2035_p10 }
  0x2f   : > { %p2041_p5 = pnand %p2039_p4, %p2036_p1 }
  0x31   : > { %2044 = shalt.err (!%p2041_p5)
}
  0x32   : > { %s2045_s16 = scalar_lea.vmem %s2296_s18, 16  ;;  %s2052_s6 = scalar_lea.vmem %s2296_s18, 32 }
  0x33   : > { %p2046_p11 = scmp.ne.s32.totalorder %s2296_s18, %s2045_s16  ;;  %p2053_p0 = scmp.lt.s32.totalorder %s2296_s18, %s2296_s18 }
  0x34   : > { %p2054_p2 = scmp.lt.s32.totalorder %s2052_s6, %s2045_s16 }
  0x35   : > { %p2048_p12 = pnand %p2046_p11, %p2308_p9 }
  0x36   : > { %p2055_p3 = por %p2054_p2, %p2053_p0 }
  0x37   : > { %p2049_p13 = pneg %p2048_p12 }
  0x39   : > { %p2056_p6 = pnand %p2055_p3, %p2049_p13 }
  0x3b   : > { %2059 = shalt.err (!%p2056_p6)
}
  0x3c   : > { %1917 = dma.hbm_to_vmem [thread:$0]  (!%p2292_p7), %s2639_s11, 16, %s2296_s18, [#allocation6]  }
  0x3d   : > { %s2060_s24 = scalar_lea.hbm %s2640_s12, 16 }
  0x3e   : > { %p2061_p8 = scmp.ne.s32.totalorder %s2640_s12, %s2060_s24  ;;  %p2067_p4 = scmp.lt.u32.totalorder %s2060_s24, %s2640_s12 }
  0x40   : > { %p2063_p10 = pnand %p2061_p8, %p2308_p9 }
  0x42   : > { %p2064_p1 = pneg %p2063_p10 }
  0x44   : > { %p2069_p5 = pnand %p2067_p4, %p2064_p1 }
  0x46   : > { %2072 = shalt.err (!%p2069_p5)
}
  0x47   : > { %s2073_s18 = scalar_lea.vmem %s2298_s21, 16  ;;  %s2080_s6 = scalar_lea.vmem %s2298_s21, 32 }
  0x48   : > { %p2074_p11 = scmp.ne.s32.totalorder %s2298_s21, %s2073_s18  ;;  %p2081_p0 = scmp.lt.s32.totalorder %s2298_s21, %s2298_s21 }
  0x49   : > { %p2082_p2 = scmp.lt.s32.totalorder %s2080_s6, %s2073_s18 }
  0x4a   : > { %p2076_p12 = pnand %p2074_p11, %p2308_p9 }
  0x4b   : > { %p2083_p3 = por %p2082_p2, %p2081_p0 }
  0x4c   : > { %p2077_p13 = pneg %p2076_p12 }
  0x4e   : > { %p2084_p6 = pnand %p2083_p3, %p2077_p13 }
  0x50   : > { %2087 = shalt.err (!%p2084_p6)
}
  0x51   : > { %1920 = dma.hbm_to_vmem [thread:$0]  (!%p2292_p7), %s2640_s12, 16, %s2298_s21, [#allocation9]  }
  0x52   : > { %s2373_s17 = sadd.s32 1, %s2160_s28   ;;  %s35_s19 = sadd.s32 1, %s2156_s27 }
  0x53   : > { %s32_s15 = ssub.s32 %s2160_s28, %s2373_s17  ;;  %p42_p8 = scmp.ne.s32.totalorder %s2156_s27, %s2152_s26 }
  0x54   : > { %p33_p9 = scmp.eq.s32.totalorder %s32_s15, 0  ;;  %p43_p10 = scmp.eq.s32.totalorder %s2160_s28, 0 }
  0x55   : > { %p1928_p1 = scmp.lt.s32.totalorder %s2160_s28, 2  ;;  %s410_s24 = sand.u32 1, %s2156_s27  }
  0x56   : > { %s2383_s13 = scalar_select %p33_p9, %s2156_s27, %s35_s19  }
  0x57   : > { %p44_p4 = por %p43_p10, %p42_p8  ;;  %s1701_s20 = sshll.u32 %s410_s24, 3 }
  0x58   : > { %s1702_s22 = sshll.u32 %s2160_s28, 7  ;;  %s414_s21 = scalar_lea.vmem [#allocation3], %s1701_s20 }
  0x59   : > { %s2390_s18 = scalar_lea.hbm %s2628_s0, %s1702_s22  ;;  %s421_s6 = sshll.u32 %s414_s21, 4  ;;  %s2392_s6 = int_to_ptr.vmem [resolvable:$true] %s421_s6 }
  0x5a   : > { %p2394_p7 = pnand %p1928_p1, %p44_p4  ;;  %s411_s28 = scalar_lea.sflag [#allocation4], %s410_s24 }
  0x5b   : > { %s2088_s25 = scalar_lea.hbm %s2390_s18, 128  ;;  %s2093_s20 = scalar_lea.hbm %s2628_s0, 256 }
  0x5c   : > { %p2089_p5 = scmp.ne.s32.totalorder %s2390_s18, %s2088_s25  ;;  %p2090_p11 = pneg %p2394_p7 }
  0x5d   : > { %p2094_p0 = scmp.lt.u32.totalorder %s2390_s18, %s2628_s0  ;;  %p2095_p2 = scmp.lt.u32.totalorder %s2093_s20, %s2088_s25 }
  0x5e   : > { %p2091_p12 = pnand %p2090_p11, %p2089_p5  ;;  %p2097_p6 = scmp.lt.u32.totalorder %s2088_s25, %s2390_s18 }
  0x5f   : > { %p2096_p3 = por %p2095_p2, %p2094_p0 }
  0x60   : > { %p2092_p13 = pneg %p2091_p12 }
  0x61   : > { %p2098_p9 = por %p2097_p6, %p2096_p3 }
  0x63   : > { %p2099_p8 = pnand %p2098_p9, %p2092_p13 }
  0x65   : > { %2102 = shalt.err (!%p2099_p8)
}
  0x66   : > { %s2103_s24 = scalar_lea.vmem %s2392_s6, 128  ;;  %s2165_s16 = smov [#allocation3]  }
  0x67   : > { %p2104_p10 = scmp.ne.s32.totalorder %s2392_s6, %s2103_s24  ;;  %s2108_s21 = sshll.u32 %s2165_s16, 4  ;;  %s2109_s21 = int_to_ptr.vmem [resolvable:$false] %s2108_s21 }
  0x68   : > { %s2110_s15 = scalar_lea.vmem %s2109_s21, 256  ;;  %p2111_p5 = scmp.lt.s32.totalorder %s2392_s6, %s2109_s21 }
  0x69   : > { %p2106_p1 = pnand %p2104_p10, %p2090_p11  ;;  %p2112_p12 = scmp.lt.s32.totalorder %s2110_s15, %s2103_s24 }
  0x6b   : > { %p2107_p4 = pneg %p2106_p1  ;;  %p2113_p0 = por %p2112_p12, %p2111_p5 }
  0x6d   : > { %p2114_p2 = pnand %p2113_p0, %p2107_p4 }
  0x6f   : > { %2117 = shalt.err (!%p2114_p2)
}
  0x70   : > { %1924 = dma.hbm_to_vmem [thread:$0]  (!%p2394_p7), %s2390_s18, 128, %s2392_s6, %s411_s28  }
  0x71   : > { %p2653_p13 = scmp.ne.s32.totalorder %s2649_s14, 0 }
  0x72   : > { %s432_s25 = sand.u32 (!%p2653_p13), 1, %s2152_s26   ;;  %p2654_p11 = scmp.ne.s32.totalorder (!%p2653_p13), %s2648_s30, 0 }
  0x73   : > { %430 = sbr.rel (%p2653_p13) target bundleno = 2672 (0xa70), region = 72  ;;  %s1704_s19 = sshll.u32 (!%p2653_p13), %s432_s25, 3 }
  0x74   : > { %s433_s20 = scalar_lea.sflag (!%p2653_p13), [#allocation4], %s432_s25  ;;  %s436_s22 = scalar_lea.vmem (!%p2653_p13), [#allocation3], %s1704_s19 }
  0x7a   : > { %2135 = dma.done.wait (%p2654_p11), %s433_s20, 128  }
  0x7b   : > { %2137 = vsyncadd (%p2654_p11), %s433_s20, 4294967168  ;;  %p2655_p3 = scmp.eq.s32.totalorder %s2272_s29, 0 }
  0x7d   : > { %2139 = dma.done.wait (%p2655_p3), [#allocation6], 32   ;;  %p2656_p6 = pmov %p2655_p3 }
  0x7e   : > { %p2657_p7 = pmov %p2655_p3 }
  0x7f   : > { %2141 = vsyncadd (%p2656_p6), [#allocation6], 4294967264 }
  0x80   : > { %2143 = dma.done.wait (%p2657_p7), [#allocation9], 16   ;;  %p2658_p9 = pmov %p2655_p3 }
  0x81   : > { %v2166_v0 = vmov 0.0|0.0   ;;  %vm2167_vm0 = vmmov 0   ;;  %v2168_v1 = vmov 0.0   ;;  %v495_v2 = vld [vmem:[%s2629_s1] sm:$0xff]  ;;  %v496_v3 = vld [vmem:[%s2629_s1 + $0x8] sm:$0xff]  ;;  %v497_v4 = vld [vmem:[%s2629_s1 + $0x10] sm:$0xff]  ;;  %v580_v20 = vlaneseq }
  0x82   : > { %2145 = vsyncadd (%p2658_p9), [#allocation9], 4294967280  ;;  %1867 = vmatprep.subr.bf16.mxu1 %v2166_v0  ;;  %1783 = vmatprep.mubr.msk.f32.mxu1 %vm2167_vm0, %v2168_v1  ;;  %v1868_v5 = vpack.c.bf16 %v496_v3, %v495_v2  ;;  %v498_v6 = vld [vmem:[%s2629_s1 + $0x18] sm:$0xff]  ;;  %v2457_v8 = vld [vmem:[%s436_s22] sm:$0xff]  ;;  %vm506_vm1 = vcmask 261120   ;;  %s2169_s15 = smov 120  }
  0x83   : > { %1796 = vmatprep.subr.mxu0 %v2168_v1  ;;  %1798 = vmatprep.mubr.msk.f32.mxu0 %vm2167_vm0, %v2168_v1  ;;  %v1871_v7 = vpack.c.bf16 %v498_v6, %v497_v4  ;;  %v1709_v9 = vld [vmem:[%s2630_s2] ss:$0 sm:$0xff]  ;;  %s2170_s25 = smov 96   ;;  %s2171_s19 = smov 80   ;;  %vm588_vm2 = vcmask 64512   ;;  %v581_v21 = vshrl.u32 %v580_v20, 7 }
  0x84   : > { %1869 = vmatpush3.bf16.msra.mxu1 %v1868_v5  ;;  %s2172_s20 = smov 88   ;;  %s2173_s22 = smov 72   ;;  %v583_v22 = vand.u32 127, %v580_v20  ;;  %vm1277_vm4 = vcmask 130048   ;;  %vm1279_vm5 = vcmask 195584   ;;  %vm1496_vm6 = vcmask 523264  }
  0x85   : > { %1870 = vmatprep.subr.bf16.mxu1 %v2166_v0  ;;  %s2174_s30 = smov 112   ;;  %s2175_s14 = smov 104  }
  0x86   : > { %vm584_vm3 = vcmp.gt.s32.totalorder %v583_v22, %v581_v21  ;;  %s2176_s18 = smov 56   ;;  %s2177_s6 = smov 64  }
  0x87   : > { %s2178_s10 = smov 48   ;;  %s2179_s28 = smov 40  }
  0x88   : > { %1872 = vmatpush3.bf16.msra.mxu1 %v1871_v7  ;;  %p490_p8 = scmp.lt.s32.totalorder %s2272_s29, 1  ;;  %s2661_s21 = sld [smem:[#allocation15_spill]] }
  0x89   : > { %1786 = vmatprep.subr.mxu1 %v2168_v1 }
  0x8a   : > { %s2667_s29 = smov (!%p490_p8, %s2272_s29), 1 }
  0x8b   : > { %1784 = vmatmul.mubr.msk.f32.vlgmr.msra.gmra.mrb[0].mxu1 %vm506_vm1, %v2457_v8  ;;  %s1708_s23 = sshll.u32 %s2667_s29, 3 }
  0x8c   : > { %1788 = vmatprep.mubr.msk.f32.mxu1 %vm2167_vm0, %v2168_v1 }
 0x15e   : > { %v576_v10 = vpop.f32.mrb[0].mxu1 }
 0x15f   : > { %v2467_v11 = vadd.f32 %v1709_v9, %v576_v10  ;;  %v1785_v12 = vpop.f32.mrb[1].mxu1 }
 0x161   : > { %753 = vrot.lane.b32.xlu1 %v2467_v11, %s2169_s15  ;;  %586 = vrot.lane.b32.xlu0 %v2467_v11, %s2170_s25  ;;  %s493_s15 = scalar_lea.vmem %s2661_s21, %s1708_s23 }
 0x165   : > { %923 = vrot.lane.b32.xlu1 %v2467_v11, %s2171_s19  ;;  %755 = vrot.lane.b32.xlu0 %v2467_v11, %s2172_s20  ;;  %s2659_s20 = sld [smem:[#allocation13_spill]] }
 0x169   : > { %1091 = vrot.lane.b32.xlu1 %v2467_v11, %s2173_s22  ;;  %921 = vrot.lane.b32.xlu0 %v2467_v11, %s2174_s30  ;;  %s2180_s22 = smov 16   ;;  %s2181_s30 = smov 8  }
 0x16d   : > { %1089 = vrot.lane.b32.xlu0 %v2467_v11, %s2175_s14  ;;  %s2182_s14 = smov 24  }
 0x1d3   : > { %v754_v13 = vpop.permute.xlu1 %753  ;;  %v587_v14 = vpop.permute.xlu0 %586 }
 0x1d4   : > { %1787 = vmatpush3.xpose.msk.msra.mxu1 %vm588_vm2, %v587_v14 }
 0x1d5   : > { %1791 = vmatprep.subr.mxu1 %v2168_v1 }
 0x1d7   : > { %1789 = vmatmul.mubr.msk.f32.vlgmr.msra.gmra.mrb[2].mxu1 %vm588_vm2, %v2467_v11  ;;  %v756_v15 = vpop.permute.xlu0 %755  ;;  %v924_v16 = vpop.permute.xlu1 %923 }
 0x1d8   : > { %1797 = vmatpush3.xpose.msk.msra.mxu0 %vm588_vm2, %v756_v15  ;;  %1793 = vmatprep.mubr.msk.f32.mxu1 %vm2167_vm0, %v2168_v1 }
 0x1d9   : > { %1806 = vmatprep.subr.mxu0 %v2168_v1 }
 0x1db   : > { %1799 = vmatmul.mubr.msk.f32.vlgmr.msra.gmra.mrb[0].mxu0 %vm588_vm2, %v754_v13  ;;  %v922_v17 = vpop.permute.xlu0 %921  ;;  %v1092_v18 = vpop.permute.xlu1 %1091 }
 0x1dc   : > { %1807 = vmatpush3.xpose.msk.msra.mxu0 %vm588_vm2, %v924_v16  ;;  %1808 = vmatprep.mubr.msk.f32.mxu0 %vm2167_vm0, %v2168_v1 }
 0x1dd   : > { %1816 = vmatprep.subr.mxu0 %v2168_v1 }
 0x1df   : > { %1809 = vmatmul.mubr.msk.f32.vlgmr.msra.gmra.mrb[2].mxu0 %vm588_vm2, %v922_v17  ;;  %v1090_v19 = vpop.permute.xlu0 %1089 }
 0x1e0   : > { %1817 = vmatpush3.xpose.msk.msra.mxu0 %vm588_vm2, %v1092_v18  ;;  %1818 = vmatprep.mubr.msk.f32.mxu0 %vm2167_vm0, %v2168_v1  ;;  %v1281_v18 = vld [vmem:[%s2631_s3] sm:$0xff] }
 0x1e1   : > { %1873 = vmatprep.subr.bf16.mxu0 %v2166_v0 }
 0x1e3   : > { %1819 = vmatmul.mubr.msk.f32.vlgmr.msra.gmra.mrb[4].mxu0 %vm588_vm2, %v1090_v19  ;;  %v1282_v19 = vld [vmem:[%s2631_s3 + $0x8] sm:$0xff] }
 0x1e4   : > { %1834 = vmatprep.mubr.msk.f32.mxu0 %vm2167_vm0, %v2168_v1  ;;  %v1874_v20 = vpack.c.bf16 %v1282_v19, %v1281_v18 }
 0x1e6   : > { %1875 = vmatpush3.bf16.msra.mxu0 %v1874_v20 }
 0x1e7   : > { %1876 = vmatprep.subr.bf16.mxu0 %v2166_v0 }
 0x2aa   : > { %v659_v23 = vpop.f32.mrb[2].mxu1 }
 0x2ab   : > { %v663_v24 = vmul.f32 0.35355338, %v659_v23  ;;  %v1790_v25 = vpop.f32.mrb[3].mxu1 }
 0x2ad   : > { %v664_v26 = vsel %vm584_vm3, -inf, %v663_v24 }
 0x2ae   : > { %v827_v27 = vpop.f32.mrb[0].mxu0  ;;  %v665_v28 = vsel %vm588_vm2, %v664_v26, -inf }
 0x2af   : > { %v831_v29 = vmul.f32 0.35355338, %v827_v27  ;;  %v1800_v30 = vpop.f32.mrb[1].mxu0  ;;  %666 = vmax.xlane.f32.xlu1 %v665_v28  ;;  %v1284_v27 = vld [vmem:[%s2631_s3 + $0x18] sm:$0xff] }
 0x2b1   : > { %v832_v31 = vsel %vm584_vm3, -inf, %v831_v29 }
 0x2b2   : > { %v995_v32 = vpop.f32.mrb[2].mxu0  ;;  %v833_v33 = vsel %vm588_vm2, %v832_v31, -inf }
 0x2b3   : > { %v999_v34 = vmul.f32 0.35355338, %v995_v32  ;;  %834 = vmax.xlane.f32.xlu0 %v833_v33  ;;  %v1810_v35 = vpop.f32.mrb[3].mxu0 }
 0x2b5   : > { %v1000_v36 = vsel %vm584_vm3, -inf, %v999_v34 }
 0x2b6   : > { %v1163_v37 = vpop.f32.mrb[4].mxu0  ;;  %v1001_v38 = vsel %vm588_vm2, %v1000_v36, -inf }
 0x2b7   : > { %v1167_v39 = vmul.f32 0.35355338, %v1163_v37  ;;  %1002 = vmax.xlane.f32.xlu0 %v1001_v38  ;;  %v1820_v40 = vpop.f32.mrb[5].mxu0 }
 0x2b9   : > { %v1168_v41 = vsel %vm584_vm3, -inf, %v1167_v39 }
 0x2ba   : > { %v1169_v42 = vsel %vm588_vm2, %v1168_v41, -inf }
 0x2bb   : > { %1170 = vmax.xlane.f32.xlu1 %v1169_v42  ;;  %v1723_v42 = vld [vmem:[%s2632_s4] ss:$0 sm:$0xff] }
 0x2cc   : > { %844 = vrot.lane.b32.xlu1 %v2467_v11, %s2176_s18 }
 0x33c   : > { %v667_v43 = vpop.xlane.xlu1 %666 }
 0x33d   : > { %v668_v44 = vsub.f32 %v664_v26, %v667_v43  ;;  %v1283_v26 = vld [vmem:[%s2631_s3 + $0x10] sm:$0xff] }
 0x33e   : > { %v1877_v29 = vpack.c.bf16 %v1284_v27, %v1283_v26 }
 0x33f   : > { %v669_v45 = vmul.f32 1.442695, %v668_v44 }
 0x340   : > { %v835_v46 = vpop.xlane.xlu0 %834  ;;  %1878 = vmatpush3.bf16.msra.mxu0 %v1877_v29 }
 0x341   : > { %1984 = vpow2.f32 %v669_v45  ;;  %v836_v47 = vsub.f32 %v832_v31, %v835_v46  ;;  %1885 = vmatprep.subr.bf16.mxu0 %v2166_v0 }
 0x343   : > { %v837_v48 = vmul.f32 1.442695, %v836_v47 }
 0x344   : > { %v1003_v58 = vpop.xlane.xlu0 %1002 }
 0x345   : > { %1986 = vpow2.f32 %v837_v48  ;;  %v1004_v59 = vsub.f32 %v1000_v36, %v1003_v58  ;;  %v1482_v58 = vld [vmem:[%s2637_s9 + $0x8] sm:$0xff] }
 0x347   : > { %v1005_v60 = vmul.f32 1.442695, %v1004_v59  ;;  %v1483_v59 = vld [vmem:[%s2637_s9 + $0x10] sm:$0xff] }
 0x348   : > { %v1171_v49 = vpop.xlane.xlu1 %1170 }
 0x349   : > { %v1172_v50 = vsub.f32 %v1168_v41, %v1171_v49 }
 0x34b   : > { %v1985_v51 = vpop.eup %1984  ;;  %v1173_v52 = vmul.f32 1.442695, %v1172_v50 }
 0x34c   : > { %v671_v53 = vsel %vm588_vm2, %v1985_v51, 0.0  ;;  %v845_v63 = vpop.permute.xlu1 %844 }
 0x34d   : > { %1988 = vpow2.f32 %v1173_v52  ;;  %672 = vadd.xlane.f32.xlu0 %v671_v53  ;;  %v1397_v53 = vld [vmem:[%s2635_s7 + $0x8] sm:$0xff] }
 0x34e   : > { %1990 = vpow2.f32 %v1005_v60 }
 0x34f   : > { %v1987_v54 = vpop.eup %1986 }
 0x350   : > { %v839_v55 = vsel %vm588_vm2, %v1987_v54, 0.0 }
 0x351   : > { %840 = vadd.xlane.f32.xlu1 %v839_v55  ;;  %v1399_v55 = vld [vmem:[%s2635_s7 + $0x18] sm:$0xff] }
 0x357   : > { %v1989_v56 = vpop.eup %1988 }
 0x358   : > { %v1175_v57 = vsel %vm588_vm2, %v1989_v56, 0.0  ;;  %v1991_v61 = vpop.eup %1990 }
 0x359   : > { %1176 = vadd.xlane.f32.xlu1 %v1175_v57  ;;  %v1007_v62 = vsel %vm588_vm2, %v1991_v61, 0.0  ;;  %v1481_v57 = vld [vmem:[%s2637_s9] sm:$0xff] }
 0x35a   : > { %v1886_v60 = vpack.c.bf16 %v1482_v58, %v1481_v57 }
 0x363   : > { %676 = vrot.lane.b32.xlu0 %v2467_v11, %s2177_s6 }
 0x36a   : > { %1012 = vrot.lane.b32.xlu1 %v2467_v11, %s2178_s10 }
 0x382   : > { %1008 = vadd.xlane.f32.xlu0 %v1007_v62 }
 0x398   : > { %1180 = vrot.lane.b32.xlu0 %v2467_v11, %s2179_s28  ;;  %s2660_s28 = sld [smem:[#allocation14_spill]] }
 0x3da   : > { %v673_v2 = vpop.xlane.xlu0 %672 }
 0x3db   : > { %1992 = vrcp.f32 %v673_v2  ;;  %v1486_v2 = vld [vmem:[%s2637_s9 + $0x28] sm:$0xff] }
 0x3de   : > { %v677_v3 = vpop.permute.xlu0 %676  ;;  %v841_v4 = vpop.xlane.xlu1 %840 }
 0x3df   : > { %1994 = vrcp.f32 %v841_v4  ;;  %1792 = vmatpush3.msra.mxu1 %v677_v3 }
 0x3e0   : > { %1801 = vmatprep.subr.mxu1 %v2168_v1 }
 0x3e5   : > { %v1993_v5 = vpop.eup %1992 }
 0x3e6   : > { %v675_v6 = vmul.f32 %v1993_v5, %v1985_v51  ;;  %v1177_v7 = vpop.xlane.xlu1 %1176 }
 0x3e8   : > { %1794 = vmatmul.mubr.msk.f32.vlgmr.msra.gmra.mrb[4].mxu1 %vm588_vm2, %v675_v6 }
 0x3e9   : > { %v1995_v9 = vpop.eup %1994  ;;  %1802 = vmatpush3.msra.mxu1 %v845_v63  ;;  %1803 = vmatprep.mubr.msk.f32.mxu1 %vm2167_vm0, %v2168_v1  ;;  %v1485_v63 = vld [vmem:[%s2637_s9 + $0x20] sm:$0xff] }
 0x3ea   : > { %v843_v10 = vmul.f32 %v1995_v9, %v1987_v54  ;;  %v1013_v11 = vpop.permute.xlu1 %1012  ;;  %1811 = vmatprep.subr.mxu1 %v2168_v1  ;;  %v1892_v3 = vpack.c.bf16 %v1486_v2, %v1485_v63  ;;  %v1725_v9 = vld [vmem:[%s2633_s5] ss:$0 sm:$0xff] }
 0x3ec   : > { %1804 = vmatmul.mubr.msk.f32.vlgmr.msra.gmra.mrb[6].mxu1 %vm588_vm2, %v843_v10 }
 0x3ed   : > { %1812 = vmatpush3.msra.mxu1 %v1013_v11  ;;  %1813 = vmatprep.mubr.msk.f32.mxu1 %vm2167_vm0, %v2168_v1  ;;  %v1726_v11 = vld [vmem:[%s2659_s20] ss:$0 sm:$0xff] }
 0x3ee   : > { %1821 = vmatprep.subr.mxu1 %v2168_v1 }
 0x40f   : > { %v1009_v12 = vpop.xlane.xlu0 %1008 }
 0x410   : > { %1996 = vrcp.f32 %v1009_v12 }
 0x411   : > { %1998 = vrcp.f32 %v1177_v7 }
 0x413   : > { %v1181_v16 = vpop.permute.xlu0 %1180 }
 0x41a   : > { %v1997_v13 = vpop.eup %1996 }
 0x41b   : > { %v1011_v14 = vmul.f32 %v1997_v13, %v1991_v61  ;;  %v1999_v15 = vpop.eup %1998  ;;  %v1484_v61 = vld [vmem:[%s2637_s9 + $0x18] sm:$0xff] }
 0x41c   : > { %v1179_v17 = vmul.f32 %v1999_v15, %v1989_v56  ;;  %v1889_v62 = vpack.c.bf16 %v1484_v61, %v1483_v59 }
 0x41d   : > { %1814 = vmatmul.mubr.msk.f32.vlgmr.msra.gmra.mrb[8].mxu1 %vm588_vm2, %v1011_v14  ;;  %v1488_v14 = vld [vmem:[%s2637_s9 + $0x38] sm:$0xff] }
 0x41e   : > { %1822 = vmatpush3.msra.mxu1 %v1181_v16  ;;  %1823 = vmatprep.mubr.msk.f32.mxu1 %vm2167_vm0, %v2168_v1  ;;  %v1727_v16 = vld [vmem:[#allocation5] ss:$0 sm:$0xff] }
 0x41f   : > { %1879 = vmatprep.subr.bf16.mxu1 %v2166_v0 }
 0x421   : > { %1824 = vmatmul.mubr.msk.f32.vlgmr.msra.gmra.mrb[10].mxu1 %vm588_vm2, %v1179_v17 }
 0x422   : > { %1845 = vmatprep.mubr.msk.f32.mxu1 %vm2167_vm0, %v2168_v1 }
 0x4bb   : > { %v748_v21 = vpop.f32.mrb[4].mxu1 }
 0x4bc   : > { %752 = vst.msk [vmem:[#allocation2] sm:$0xff] %vm588_vm2, %v748_v21  ;;  %v1795_v22 = vpop.f32.mrb[5].mxu1  ;;  %v1729_v21 = vld [vmem:[%s2660_s28] ss:$0 sm:$0xff] }
 0x4bf   : > { %v916_v23 = vpop.f32.mrb[6].mxu1 }
 0x4c0   : > { %920 = vst.msk [vmem:[#allocation2 + $0x8] sm:$0xff] %vm588_vm2, %v916_v23  ;;  %v1805_v24 = vpop.f32.mrb[7].mxu1 }
 0x4f0   : > { %v1084_v25 = vpop.f32.mrb[8].mxu1 }
 0x4f1   : > { %1088 = vst.msk [vmem:[#allocation2 + $0x10] sm:$0xff] %vm588_vm2, %v1084_v25  ;;  %v1815_v28 = vpop.f32.mrb[9].mxu1 }
 0x4f4   : > { %v1252_v30 = vpop.f32.mrb[10].mxu1 }
 0x4f5   : > { %1256 = vst.msk [vmem:[#allocation2 + $0x18] sm:$0xff] %vm588_vm2, %v1252_v30  ;;  %v1825_v31 = vpop.f32.mrb[11].mxu1 }
 0x4fc   : > { %v1261_v32 = vld [vmem:[#allocation2 + $0x2] ss:$4 sm:$0xff]  ;;  %v1259_v33 = vld [vmem:[#allocation2 + $0x1] ss:$4 sm:$0xff]  ;;  %v1263_v34 = vld [vmem:[#allocation2 + $0x3] ss:$4 sm:$0xff] }
 0x4fd   : > { %1269 = vrot.lane.b32.xlu0 %v1261_v32, %s2180_s22  ;;  %1265 = vrot.lane.b32.xlu1 %v1259_v33, %s2181_s30  ;;  %v1257_v36 = vld [vmem:[#allocation2] ss:$4 sm:$0xff] }
 0x501   : > { %1273 = vrot.lane.b32.xlu1 %v1263_v34, %s2182_s14 }
 0x56f   : > { %v1266_v35 = vpop.permute.xlu1 %1265  ;;  %v1270_v37 = vpop.permute.xlu0 %1269 }
 0x570   : > { %v1276_v38 = vsel %vm588_vm2, %v1257_v36, %v1266_v35  ;;  %v1731_v36 = vld [vmem:[#allocation7] ss:$0 sm:$0xff] }
 0x571   : > { %v1278_v40 = vsel %vm1277_vm4, %v1276_v38, %v1270_v37  ;;  %v1732_v38 = vld [vmem:[#allocation8] ss:$0 sm:$0xff] }
 0x573   : > { %v1274_v39 = vpop.permute.xlu1 %1273 }
 0x574   : > { %v1280_v41 = vsel %vm1279_vm5, %v1278_v40, %v1274_v39 }
 0x575   : > { %1835 = vmatmul.mubr.msk.f32.vlgmr.msra.gmra.mrb[6].mxu0 %vm506_vm1, %v1280_v41 }
 0x576   : > { %1864 = vmatprep.mubr.msk.f32.mxu0 %vm2167_vm0, %v2168_v1  ;;  %v1396_v1 = vld [vmem:[%s2635_s7] sm:$0xff]  ;;  %1887 = vmatpush3.bf16.msra.mxu0 %v1886_v60 }
 0x577   : > { %v1880_v54 = vpack.c.bf16 %v1397_v53, %v1396_v1  ;;  %1888 = vmatprep.subr.bf16.mxu0 %v2166_v0 }
 0x579   : > { %1881 = vmatpush3.bf16.msra.mxu1 %v1880_v54 }
 0x57a   : > { %1882 = vmatprep.subr.bf16.mxu1 %v2166_v0  ;;  %1890 = vmatpush3.bf16.msra.mxu0 %v1889_v62 }
 0x57b   : > { %1891 = vmatprep.subr.bf16.mxu0 %v2166_v0 }
 0x57e   : > { %1893 = vmatpush3.bf16.msra.mxu0 %v1892_v3 }
 0x57f   : > { %1894 = vmatprep.subr.bf16.mxu0 %v2166_v0  ;;  %v1487_v0 = vld [vmem:[%s2637_s9 + $0x30] sm:$0xff] }
 0x580   : > { %v1895_v15 = vpack.c.bf16 %v1488_v14, %v1487_v0 }
 0x582   : > { %1896 = vmatpush3.bf16.msra.mxu0 %v1895_v15 }
 0x648   : > { %v1361_v43 = vpop.f32.mrb[6].mxu0 }
 0x649   : > { %v1362_v44 = vadd.f32 %v1723_v42, %v1361_v43  ;;  %v1836_v45 = vpop.f32.mrb[7].mxu0 }
 0x64b   : > { %v1365_v46 = vadd.f32 %v1362_v44, %v2457_v8  ;;  %v1398_v8 = vld [vmem:[%s2635_s7 + $0x10] sm:$0xff] }
 0x64c   : > { %v1883_v56 = vpack.c.bf16 %v1399_v55, %v1398_v8 }
 0x64d   : > { %v1368_v47 = vsel %vm506_vm1, %v1365_v46, 0.0 }
 0x64e   : > { %1369 = vadd.xlane.f32.xlu0 %v1368_v47  ;;  %1884 = vmatpush3.bf16.msra.mxu1 %v1883_v56 }
 0x6db   : > { %v1370_v48 = vpop.xlane.xlu0 %1369 }
 0x6dc   : > { %v1372_v49 = vmul.f32 0.03125, %v1370_v48 }
 0x6de   : > { %v1373_v50 = vsub.f32 %v1365_v46, %v1372_v49 }
 0x6e0   : > { %v1374_v51 = vmul.f32 %v1373_v50, %v1373_v50 }
 0x6e2   : > { %v1375_v52 = vsel %vm506_vm1, %v1374_v51, 0.0 }
 0x6e3   : > { %1376 = vadd.xlane.f32.xlu1 %v1375_v52 }
 0x770   : > { %v1377_v4 = vpop.xlane.xlu1 %1376 }
 0x771   : > { %v1378_v5 = vmul.f32 0.03125, %v1377_v4 }
 0x773   : > { %v1379_v6 = vadd.f32 1e-05, %v1378_v5 }
 0x775   : > { %2000 = vrsqrt.f32 %v1379_v6 }
 0x77f   : > { %v2001_v7 = vpop.eup %2000 }
 0x780   : > { %v1381_v10 = vmul.f32 %v2001_v7, %v1373_v50 }
 0x782   : > { %v1388_v12 = vmul.f32 %v1725_v9, %v1381_v10 }
 0x784   : > { %v1395_v13 = vadd.f32 %v1726_v11, %v1388_v12 }
 0x786   : > { %1846 = vmatmul.mubr.msk.f32.vlgmr.msra.gmra.mrb[12].mxu1 %vm506_vm1, %v1395_v13 }
 0x859   : > { %v1476_v17 = vpop.f32.mrb[12].mxu1 }
 0x85a   : > { %v1477_v18 = vadd.f32 %v1727_v16, %v1476_v17  ;;  %v1847_v19 = vpop.f32.mrb[13].mxu1 }
 0x85c   : > { %v1480_v20 = vmax.f32 %v1477_v18, 0.0 }
 0x85e   : > { %1865 = vmatmul.mubr.msk.f32.vlgmr.msra.gmra.mrb[8].mxu0 %vm1496_vm6, %v1480_v20 }
 0x931   : > { %v1566_v22 = vpop.f32.mrb[8].mxu0 }
 0x932   : > { %v1567_v23 = vadd.f32 %v1729_v21, %v1566_v22  ;;  %v1866_v24 = vpop.f32.mrb[9].mxu0 }
 0x934   : > { %v1570_v25 = vadd.f32 %v1567_v23, %v1395_v13 }
 0x936   : > { %v1573_v26 = vsel %vm506_vm1, %v1570_v25, 0.0 }
 0x937   : > { %1574 = vadd.xlane.f32.xlu0 %v1573_v26 }
 0x9c4   : > { %v1575_v27 = vpop.xlane.xlu0 %1574 }
 0x9c5   : > { %v1576_v28 = vmul.f32 0.03125, %v1575_v27 }
 0x9c7   : > { %v1577_v29 = vsub.f32 %v1570_v25, %v1576_v28 }
 0x9c9   : > { %v1578_v30 = vmul.f32 %v1577_v29, %v1577_v29 }
 0x9cb   : > { %v1579_v31 = vsel %vm506_vm1, %v1578_v30, 0.0 }
 0x9cc   : > { %1580 = vadd.xlane.f32.xlu0 %v1579_v31 }
 0xa59   : > { %v1581_v32 = vpop.xlane.xlu0 %1580 }
 0xa5a   : > { %v1582_v33 = vmul.f32 0.03125, %v1581_v32 }
 0xa5c   : > { %v1583_v34 = vadd.f32 1e-05, %v1582_v33 }
 0xa5e   : > { %2002 = vrsqrt.f32 %v1583_v34 }
 0xa68   : > { %v2003_v35 = vpop.eup %2002 }
 0xa69   : > { %v1585_v37 = vmul.f32 %v2003_v35, %v1577_v29 }
 0xa6b   : > { %v1592_v39 = vmul.f32 %v1731_v36, %v1585_v37 }
 0xa6d   : > { %v1599_v40 = vadd.f32 %v1732_v38, %v1592_v39 }
 0xa6f   : > { %1600 = vst.msk [vmem:[%s493_s15] sm:$0xff] %vm506_vm1, %v1599_v40 }
 0xa70 PF: > { %p25_p10 = scmp.ge.s32.totalorder %s2373_s17, 4   ;;  %s2662_s25 = smov %s2152_s26 }
 0xa71   : > { %s2663_s26 = smov %s2156_s27  ;;  %s2664_s27 = smov %s2383_s13 }
 0xa72   : > { %s2665_s28 = smov %s2373_s17  ;;  %27 = sbr.rel (!%p25_p10) target bundleno = 9 (0x9), region = 127 }
 0xa79   :  { %1620 = vsyncpa [#allocation4], 1 }
 0xa7a   :  { %1622 = vsyncpa [#allocation4 + $0x1], 1 }
 0xa7b   :  { %1623 = vsyncpa [#allocation6], 1 }
 0xa7c   :  { %1624 = vsyncpa [#allocation9], 1 }

// kernel: decoder_forward.3
= control target key start
LH: loop header
LB: loop body
LE: loop exit
PB: predicated region body
PF: predicated region fallthrough
CT: control target
= control target key end

     0   :  { %s2321_s0 = inlined_call_operand.vmem [shape: f32[2,8,32], index: 0, kind: input, shape index: {}]   ;;  %s2322_s1 = inlined_call_operand.vmem [shape: f32[32,96], index: 1, kind: input, shape index: {}]   ;;  %s2323_s2 = inlined_call_operand.vmem [shape: f32[1,96], index: 2, kind: input, shape index: {}]   ;;  %s2324_s3 = inlined_call_operand.vmem [shape: f32[32,32], index: 3, kind: input, shape index: {}]   ;;  %s2325_s4 = inlined_call_operand.vmem [shape: f32[1,32], index: 4, kind: input, shape index: {}]   ;;  %s2326_s5 = inlined_call_operand.vmem [shape: f32[1,32], index: 5, kind: input, shape index: {}]   ;;  %s2327_s6 = inlined_call_operand.vmem [shape: f32[1,32], index: 6, kind: input, shape index: {}]   ;;  %s2328_s7 = inlined_call_operand.vmem [shape: f32[32,64], index: 7, kind: input, shape index: {}]   ;;  %s2329_s8 = inlined_call_operand.vmem [shape: f32[1,64], index: 8, kind: input, shape index: {}]   ;;  %s2330_s9 = inlined_call_operand.vmem [shape: f32[64,32], index: 9, kind: input, shape index: {}]   ;;  %s2331_s10 = inlined_call_operand.vmem [shape: f32[1,32], index: 10, kind: input, shape index: {}]   ;;  %s2332_s11 = inlined_call_operand.vmem [shape: f32[1,32], index: 11, kind: input, shape index: {}]   ;;  %s2333_s12 = inlined_call_operand.vmem [shape: f32[1,32], index: 12, kind: input, shape index: {}]   ;;  %s2334_s13 = inlined_call_operand.hbm [shape: f32[2,8,32], index: 13, kind: output, shape index: {}]  }
   0x1   :  { %2335 = sst [smem:[#allocation6_spill]] %s2321_s0 }
   0x2   :  { %2336 = sst [smem:[#allocation7_spill]] %s2322_s1 }
   0x3   :  { %2337 = sst [smem:[#allocation8_spill]] %s2323_s2 }
   0x4   :  { %2338 = sst [smem:[#allocation9_spill]] %s2324_s3 }
   0x5   :  { %18 = vsyncpa [#allocation4], 0 }
   0x6   :  { %20 = vsyncpa [#allocation4 + $0x1], 0  ;;  %s2040_s25 = smov 0   ;;  %s2042_s26 = smov 0  }
   0x7   :  { %s2044_s27 = smov 0   ;;  %s2046_s28 = smov 0  }
   0x8 LB: > { %s2061_s29 = sadd.s32 4294967295, %s1950_s28   ;;  %s1616_s30 = sadd.s32 4294967294, %s1950_s28   ;;  %s1950_s28 = sphi %s2046_s28, %s2348_s28   ;;  %s1946_s27 = sphi %s2044_s27, %s2347_s27   ;;  %s1942_s26 = sphi %s2042_s26, %s2346_s26   ;;  %s1938_s25 = sphi %s2040_s25, %s2345_s25  }
   0x9   : > { %s2065_s14 = sadd.s32 1, %s1950_s28   ;;  %s311_s15 = sadd.s32 1, %s1946_s27 }
   0xa   : > { %s308_s16 = ssub.s32 %s1950_s28, %s2065_s14  ;;  %p321_p0 = scmp.ne.s32.totalorder %s1946_s27, %s1942_s26 }
   0xb   : > { %p309_p1 = scmp.eq.s32.totalorder %s308_s16, 0  ;;  %p322_p2 = scmp.eq.s32.totalorder %s2061_s29, 1 }
   0xc   : > { %p327_p3 = scmp.ne.s32.totalorder %s1942_s26, %s1938_s25  ;;  %p328_p4 = scmp.eq.s32.totalorder %s1616_s30, 1 }
   0xd   : > { %s2076_s17 = scalar_select %p309_p1, %s1946_s27, %s311_s15  }
   0xe   : > { %p2078_p5 = por %p322_p2, %p321_p0  ;;  %p2082_p6 = por %p328_p4, %p327_p3 }
   0xf   : > { %p1619_p7 = scmp.ge.s32.totalorder %s1950_s28, 1  ;;  %p389_p8 = scmp.lt.s32.totalorder %s1950_s28, 3 }
  0x11   : > { %p390_p9 = pnand %p1619_p7, %p389_p8 }
  0x12   : > { %s2341_s1 = sld [smem:[#allocation7_spill]] (!%p390_p9)  ;;  %v1952_v3 = vmov (!%p390_p9), 0.0|0.0   ;;  %vm1953_vm0 = vmmov (!%p390_p9), 0   ;;  %v1954_v6 = vmov (!%p390_p9), 0.0   ;;  %p432_p10 = scmp.lt.s32.totalorder (!%p390_p9), %s2061_s29, 1  ;;  %vm448_vm1 = vcmask (!%p390_p9), 261120  }
  0x13   : > { %393 = sbr.rel (%p390_p9) target bundleno = 2580 (0xa14), region = 72  ;;  %1782 = vmatprep.subr.bf16.mxu1 (!%p390_p9), %v1952_v3  ;;  %1698 = vmatprep.mubr.msk.f32.mxu1 (!%p390_p9), %vm1953_vm0, %v1954_v6  ;;  %s2342_s0 = sld [smem:[#allocation6_spill]] (!%p390_p9)  ;;  %vm530_vm2 = vcmask (!%p390_p9), 64512   ;;  %v522_v20 = vlaneseq (!%p390_p9)  ;;  %vm1219_vm4 = vcmask (!%p390_p9), 130048   ;;  %vm1221_vm5 = vcmask (!%p390_p9), 195584  }
  0x14   : > { %1711 = vmatprep.subr.mxu0 (!%p390_p9), %v1954_v6  ;;  %1713 = vmatprep.mubr.msk.f32.mxu0 (!%p390_p9), %vm1953_vm0, %v1954_v6  ;;  %s2343_s2 = sld [smem:[#allocation8_spill]] (!%p390_p9)  ;;  %s1955_s16 = smov (!%p390_p9), 120   ;;  %vm1438_vm6 = vcmask (!%p390_p9), 523264  }
  0x15   : > { %s1958_s22 = smov (!%p390_p9), 88   ;;  %s1959_s23 = smov (!%p390_p9), 72   ;;  %v523_v21 = vshrl.u32 (!%p390_p9), %v522_v20, 7  ;;  %v525_v22 = vand.u32 (!%p390_p9), 127, %v522_v20 }
  0x16   : > { %s1961_s30 = smov (!%p390_p9), 104   ;;  %s1962_s15 = smov (!%p390_p9), 56  }
  0x17   : > { %vm526_vm3 = vcmp.gt.s32.totalorder (!%p390_p9), %v525_v22, %v523_v21  ;;  %s2344_s3 = sld [smem:[#allocation9_spill]] (!%p390_p9) }
  0x18   : > { %v437_v0 = vld [vmem:[%s2341_s1] sm:$0xff] (!%p390_p9)  ;;  %v438_v1 = vld [vmem:[%s2341_s1 + $0x8] sm:$0xff] (!%p390_p9)  ;;  %v439_v2 = vld [vmem:[%s2341_s1 + $0x10] sm:$0xff] (!%p390_p9) }
  0x19   : > { %v1783_v4 = vpack.c.bf16 (!%p390_p9), %v438_v1, %v437_v0  ;;  %v440_v5 = vld [vmem:[%s2341_s1 + $0x18] sm:$0xff] (!%p390_p9) }
  0x1a   : > { %v1786_v7 = vpack.c.bf16 %v440_v5, %v439_v2  ;;  %s433_s20 = scalar_select %p432_p10, %s2061_s29, 1  ;;  %v1622_v9 = vld [vmem:[%s2343_s2] ss:$0 sm:$0xff] }
  0x1b   : > { %1784 = vmatpush3.bf16.msra.mxu1 %v1783_v4 }
  0x1c   : > { %1785 = vmatprep.subr.bf16.mxu1 %v1952_v3  ;;  %s1621_s21 = sshll.u32 %s433_s20, 3  ;;  %s1956_s20 = smov 96  }
  0x1d   : > { %s435_s24 = scalar_lea.vmem %s2342_s0, %s1621_s21  ;;  %s1957_s21 = smov 80  }
  0x1e   : > { %v2112_v8 = vld [vmem:[%s435_s24] sm:$0xff]  ;;  %s1960_s24 = smov 112  }
  0x1f   : > { %1787 = vmatpush3.bf16.msra.mxu1 %v1786_v7 }
  0x20   : > { %1701 = vmatprep.subr.mxu1 %v1954_v6 }
  0x22   : > { %1699 = vmatmul.mubr.msk.f32.vlgmr.msra.gmra.mrb[0].mxu1 %vm448_vm1, %v2112_v8 }
  0x23   : > { %1703 = vmatprep.mubr.msk.f32.mxu1 %vm1953_vm0, %v1954_v6 }
  0xf5   : > { %v518_v10 = vpop.f32.mrb[0].mxu1 }
  0xf6   : > { %v2122_v11 = vadd.f32 %v1622_v9, %v518_v10  ;;  %v1700_v12 = vpop.f32.mrb[1].mxu1 }
  0xf8   : > { %695 = vrot.lane.b32.xlu1 %v2122_v11, %s1955_s16  ;;  %528 = vrot.lane.b32.xlu0 %v2122_v11, %s1956_s20  ;;  %s1963_s16 = smov 64   ;;  %s1964_s20 = smov 48  }
  0xfc   : > { %865 = vrot.lane.b32.xlu1 %v2122_v11, %s1957_s21  ;;  %697 = vrot.lane.b32.xlu0 %v2122_v11, %s1958_s22  ;;  %s1965_s21 = smov 40   ;;  %s1966_s22 = smov 16  }
 0x100   : > { %1033 = vrot.lane.b32.xlu1 %v2122_v11, %s1959_s23  ;;  %863 = vrot.lane.b32.xlu0 %v2122_v11, %s1960_s24  ;;  %s1967_s23 = smov 8   ;;  %s1968_s24 = smov 24  }
 0x104   : > { %1031 = vrot.lane.b32.xlu0 %v2122_v11, %s1961_s30 }
 0x16a   : > { %v696_v13 = vpop.permute.xlu1 %695  ;;  %v529_v14 = vpop.permute.xlu0 %528 }
 0x16b   : > { %1702 = vmatpush3.xpose.msk.msra.mxu1 %vm530_vm2, %v529_v14 }
 0x16c   : > { %1706 = vmatprep.subr.mxu1 %v1954_v6 }
 0x16e   : > { %1704 = vmatmul.mubr.msk.f32.vlgmr.msra.gmra.mrb[2].mxu1 %vm530_vm2, %v2122_v11  ;;  %v698_v15 = vpop.permute.xlu0 %697  ;;  %v866_v16 = vpop.permute.xlu1 %865 }
 0x16f   : > { %1712 = vmatpush3.xpose.msk.msra.mxu0 %vm530_vm2, %v698_v15  ;;  %1708 = vmatprep.mubr.msk.f32.mxu1 %vm1953_vm0, %v1954_v6 }
 0x170   : > { %1721 = vmatprep.subr.mxu0 %v1954_v6 }
 0x172   : > { %1714 = vmatmul.mubr.msk.f32.vlgmr.msra.gmra.mrb[0].mxu0 %vm530_vm2, %v696_v13  ;;  %v864_v17 = vpop.permute.xlu0 %863  ;;  %v1034_v18 = vpop.permute.xlu1 %1033 }
 0x173   : > { %1722 = vmatpush3.xpose.msk.msra.mxu0 %vm530_vm2, %v866_v16  ;;  %1723 = vmatprep.mubr.msk.f32.mxu0 %vm1953_vm0, %v1954_v6 }
 0x174   : > { %1731 = vmatprep.subr.mxu0 %v1954_v6 }
 0x176   : > { %1724 = vmatmul.mubr.msk.f32.vlgmr.msra.gmra.mrb[2].mxu0 %vm530_vm2, %v864_v17  ;;  %v1032_v19 = vpop.permute.xlu0 %1031 }
 0x177   : > { %1732 = vmatpush3.xpose.msk.msra.mxu0 %vm530_vm2, %v1034_v18  ;;  %1733 = vmatprep.mubr.msk.f32.mxu0 %vm1953_vm0, %v1954_v6  ;;  %v1223_v18 = vld [vmem:[%s2344_s3] sm:$0xff] }
 0x178   : > { %1788 = vmatprep.subr.bf16.mxu0 %v1952_v3 }
 0x17a   : > { %1734 = vmatmul.mubr.msk.f32.vlgmr.msra.gmra.mrb[4].mxu0 %vm530_vm2, %v1032_v19  ;;  %v1224_v19 = vld [vmem:[%s2344_s3 + $0x8] sm:$0xff] }
 0x17b   : > { %1749 = vmatprep.mubr.msk.f32.mxu0 %vm1953_vm0, %v1954_v6  ;;  %v1789_v20 = vpack.c.bf16 %v1224_v19, %v1223_v18 }
 0x17d   : > { %1790 = vmatpush3.bf16.msra.mxu0 %v1789_v20 }
 0x17e   : > { %1791 = vmatprep.subr.bf16.mxu0 %v1952_v3 }
 0x241   : > { %v601_v23 = vpop.f32.mrb[2].mxu1 }
 0x242   : > { %v605_v24 = vmul.f32 0.35355338, %v601_v23  ;;  %v1705_v25 = vpop.f32.mrb[3].mxu1 }
 0x244   : > { %v606_v26 = vsel %vm526_vm3, -inf, %v605_v24 }
 0x245   : > { %v769_v27 = vpop.f32.mrb[0].mxu0  ;;  %v607_v28 = vsel %vm530_vm2, %v606_v26, -inf }
 0x246   : > { %v773_v29 = vmul.f32 0.35355338, %v769_v27  ;;  %v1715_v30 = vpop.f32.mrb[1].mxu0  ;;  %608 = vmax.xlane.f32.xlu1 %v607_v28  ;;  %v1226_v27 = vld [vmem:[%s2344_s3 + $0x18] sm:$0xff] }
 0x248   : > { %v774_v31 = vsel %vm526_vm3, -inf, %v773_v29 }
 0x249   : > { %v937_v32 = vpop.f32.mrb[2].mxu0  ;;  %v775_v33 = vsel %vm530_vm2, %v774_v31, -inf }
 0x24a   : > { %v941_v34 = vmul.f32 0.35355338, %v937_v32  ;;  %776 = vmax.xlane.f32.xlu0 %v775_v33  ;;  %v1725_v35 = vpop.f32.mrb[3].mxu0 }
 0x24c   : > { %v942_v36 = vsel %vm526_vm3, -inf, %v941_v34 }
 0x24d   : > { %v1105_v37 = vpop.f32.mrb[4].mxu0  ;;  %v943_v38 = vsel %vm530_vm2, %v942_v36, -inf }
 0x24e   : > { %v1109_v39 = vmul.f32 0.35355338, %v1105_v37  ;;  %944 = vmax.xlane.f32.xlu0 %v943_v38  ;;  %v1735_v40 = vpop.f32.mrb[5].mxu0 }
 0x250   : > { %v1110_v41 = vsel %vm526_vm3, -inf, %v1109_v39 }
 0x251   : > { %v1111_v42 = vsel %vm530_vm2, %v1110_v41, -inf }
 0x252   : > { %1112 = vmax.xlane.f32.xlu1 %v1111_v42  ;;  %v1636_v42 = vld [vmem:[%s2325_s4] ss:$0 sm:$0xff] }
 0x263   : > { %786 = vrot.lane.b32.xlu1 %v2122_v11, %s1962_s15 }
 0x2d3   : > { %v609_v43 = vpop.xlane.xlu1 %608 }
 0x2d4   : > { %v610_v44 = vsub.f32 %v606_v26, %v609_v43  ;;  %v1225_v26 = vld [vmem:[%s2344_s3 + $0x10] sm:$0xff] }
 0x2d5   : > { %v1792_v29 = vpack.c.bf16 %v1226_v27, %v1225_v26 }
 0x2d6   : > { %v611_v45 = vmul.f32 1.442695, %v610_v44 }
 0x2d7   : > { %v777_v46 = vpop.xlane.xlu0 %776  ;;  %1793 = vmatpush3.bf16.msra.mxu0 %v1792_v29 }
 0x2d8   : > { %1868 = vpow2.f32 %v611_v45  ;;  %v778_v47 = vsub.f32 %v774_v31, %v777_v46  ;;  %1800 = vmatprep.subr.bf16.mxu0 %v1952_v3 }
 0x2da   : > { %v779_v48 = vmul.f32 1.442695, %v778_v47 }
 0x2db   : > { %v945_v58 = vpop.xlane.xlu0 %944 }
 0x2dc   : > { %1870 = vpow2.f32 %v779_v48  ;;  %v946_v59 = vsub.f32 %v942_v36, %v945_v58  ;;  %v1424_v58 = vld [vmem:[%s2330_s9 + $0x8] sm:$0xff] }
 0x2de   : > { %v947_v60 = vmul.f32 1.442695, %v946_v59  ;;  %v1425_v59 = vld [vmem:[%s2330_s9 + $0x10] sm:$0xff] }
 0x2df   : > { %v1113_v49 = vpop.xlane.xlu1 %1112 }
 0x2e0   : > { %v1114_v50 = vsub.f32 %v1110_v41, %v1113_v49 }
 0x2e2   : > { %v1869_v51 = vpop.eup %1868  ;;  %v1115_v52 = vmul.f32 1.442695, %v1114_v50 }
 0x2e3   : > { %v613_v53 = vsel %vm530_vm2, %v1869_v51, 0.0  ;;  %v787_v63 = vpop.permute.xlu1 %786 }
 0x2e4   : > { %1872 = vpow2.f32 %v1115_v52  ;;  %614 = vadd.xlane.f32.xlu0 %v613_v53  ;;  %v1339_v53 = vld [vmem:[%s2328_s7 + $0x8] sm:$0xff] }
 0x2e5   : > { %1874 = vpow2.f32 %v947_v60 }
 0x2e6   : > { %v1871_v54 = vpop.eup %1870 }
 0x2e7   : > { %v781_v55 = vsel %vm530_vm2, %v1871_v54, 0.0 }
 0x2e8   : > { %782 = vadd.xlane.f32.xlu1 %v781_v55  ;;  %v1341_v55 = vld [vmem:[%s2328_s7 + $0x18] sm:$0xff] }
 0x2ee   : > { %v1873_v56 = vpop.eup %1872 }
 0x2ef   : > { %v1117_v57 = vsel %vm530_vm2, %v1873_v56, 0.0  ;;  %v1875_v61 = vpop.eup %1874 }
 0x2f0   : > { %1118 = vadd.xlane.f32.xlu1 %v1117_v57  ;;  %v949_v62 = vsel %vm530_vm2, %v1875_v61, 0.0  ;;  %v1423_v57 = vld [vmem:[%s2330_s9] sm:$0xff] }
 0x2f1   : > { %v1801_v60 = vpack.c.bf16 %v1424_v58, %v1423_v57 }
 0x2fa   : > { %618 = vrot.lane.b32.xlu0 %v2122_v11, %s1963_s16  ;;  %s1647_s16 = sshll.u32 %s2061_s29, 7  ;;  %s1969_s29 = smov [#allocation3]  }
 0x2fb   : > { %s2278_s3 = scalar_lea.hbm %s2334_s13, %s1647_s16 }
 0x301   : > { %954 = vrot.lane.b32.xlu1 %v2122_v11, %s1964_s20 }
 0x319   : > { %950 = vadd.xlane.f32.xlu0 %v949_v62 }
 0x32f   : > { %1122 = vrot.lane.b32.xlu0 %v2122_v11, %s1965_s21  ;;  %s429_s21 = sand.u32 1, %s1942_s26  }
 0x371   : > { %v615_v0 = vpop.xlane.xlu0 %614 }
 0x372   : > { %1876 = vrcp.f32 %v615_v0  ;;  %v1428_v0 = vld [vmem:[%s2330_s9 + $0x28] sm:$0xff] }
 0x375   : > { %v619_v1 = vpop.permute.xlu0 %618  ;;  %v783_v2 = vpop.xlane.xlu1 %782 }
 0x376   : > { %1878 = vrcp.f32 %v783_v2  ;;  %1707 = vmatpush3.msra.mxu1 %v619_v1 }
 0x377   : > { %1716 = vmatprep.subr.mxu1 %v1954_v6 }
 0x37c   : > { %v1877_v4 = vpop.eup %1876 }
 0x37d   : > { %v617_v5 = vmul.f32 %v1877_v4, %v1869_v51  ;;  %v1119_v7 = vpop.xlane.xlu1 %1118 }
 0x37f   : > { %1709 = vmatmul.mubr.msk.f32.vlgmr.msra.gmra.mrb[4].mxu1 %vm530_vm2, %v617_v5 }
 0x380   : > { %v1879_v9 = vpop.eup %1878  ;;  %1717 = vmatpush3.msra.mxu1 %v787_v63  ;;  %1718 = vmatprep.mubr.msk.f32.mxu1 %vm1953_vm0, %v1954_v6  ;;  %v1427_v63 = vld [vmem:[%s2330_s9 + $0x20] sm:$0xff] }
 0x381   : > { %v785_v10 = vmul.f32 %v1879_v9, %v1871_v54  ;;  %v955_v11 = vpop.permute.xlu1 %954  ;;  %1726 = vmatprep.subr.mxu1 %v1954_v6  ;;  %v1807_v1 = vpack.c.bf16 %v1428_v0, %v1427_v63  ;;  %v1638_v9 = vld [vmem:[%s2326_s5] ss:$0 sm:$0xff] }
 0x383   : > { %1719 = vmatmul.mubr.msk.f32.vlgmr.msra.gmra.mrb[6].mxu1 %vm530_vm2, %v785_v10 }
 0x384   : > { %1727 = vmatpush3.msra.mxu1 %v955_v11  ;;  %1728 = vmatprep.mubr.msk.f32.mxu1 %vm1953_vm0, %v1954_v6  ;;  %v1639_v11 = vld [vmem:[%s2327_s6] ss:$0 sm:$0xff] }
 0x385   : > { %1736 = vmatprep.subr.mxu1 %v1954_v6 }
 0x3a6   : > { %v951_v12 = vpop.xlane.xlu0 %950 }
 0x3a7   : > { %1880 = vrcp.f32 %v951_v12 }
 0x3a8   : > { %1882 = vrcp.f32 %v1119_v7 }
 0x3aa   : > { %v1123_v16 = vpop.permute.xlu0 %1122 }
 0x3b1   : > { %v1881_v13 = vpop.eup %1880 }
 0x3b2   : > { %v953_v14 = vmul.f32 %v1881_v13, %v1875_v61  ;;  %v1883_v15 = vpop.eup %1882  ;;  %v1426_v61 = vld [vmem:[%s2330_s9 + $0x18] sm:$0xff] }
 0x3b3   : > { %v1121_v17 = vmul.f32 %v1883_v15, %v1873_v56  ;;  %v1804_v62 = vpack.c.bf16 %v1426_v61, %v1425_v59 }
 0x3b4   : > { %1729 = vmatmul.mubr.msk.f32.vlgmr.msra.gmra.mrb[8].mxu1 %vm530_vm2, %v953_v14  ;;  %v1430_v14 = vld [vmem:[%s2330_s9 + $0x38] sm:$0xff] }
 0x3b5   : > { %1737 = vmatpush3.msra.mxu1 %v1123_v16  ;;  %1738 = vmatprep.mubr.msk.f32.mxu1 %vm1953_vm0, %v1954_v6  ;;  %v1640_v16 = vld [vmem:[%s2329_s8] ss:$0 sm:$0xff] }
 0x3b6   : > { %1794 = vmatprep.subr.bf16.mxu1 %v1952_v3 }
 0x3b8   : > { %1739 = vmatmul.mubr.msk.f32.vlgmr.msra.gmra.mrb[10].mxu1 %vm530_vm2, %v1121_v17 }
 0x3b9   : > { %1760 = vmatprep.mubr.msk.f32.mxu1 %vm1953_vm0, %v1954_v6 }
 0x452   : > { %v690_v21 = vpop.f32.mrb[4].mxu1 }
 0x453   : > { %694 = vst.msk [vmem:[#allocation2] sm:$0xff] %vm530_vm2, %v690_v21  ;;  %v1710_v22 = vpop.f32.mrb[5].mxu1  ;;  %v1642_v21 = vld [vmem:[%s2331_s10] ss:$0 sm:$0xff] }
 0x456   : > { %v858_v23 = vpop.f32.mrb[6].mxu1 }
 0x457   : > { %862 = vst.msk [vmem:[#allocation2 + $0x8] sm:$0xff] %vm530_vm2, %v858_v23  ;;  %v1720_v24 = vpop.f32.mrb[7].mxu1 }
 0x487   : > { %v1026_v25 = vpop.f32.mrb[8].mxu1 }
 0x488   : > { %1030 = vst.msk [vmem:[#allocation2 + $0x10] sm:$0xff] %vm530_vm2, %v1026_v25  ;;  %v1730_v28 = vpop.f32.mrb[9].mxu1 }
 0x48b   : > { %v1194_v30 = vpop.f32.mrb[10].mxu1 }
 0x48c   : > { %1198 = vst.msk [vmem:[#allocation2 + $0x18] sm:$0xff] %vm530_vm2, %v1194_v30  ;;  %v1740_v31 = vpop.f32.mrb[11].mxu1 }
 0x493   : > { %v1203_v32 = vld [vmem:[#allocation2 + $0x2] ss:$4 sm:$0xff]  ;;  %v1201_v33 = vld [vmem:[#allocation2 + $0x1] ss:$4 sm:$0xff]  ;;  %v1205_v34 = vld [vmem:[#allocation2 + $0x3] ss:$4 sm:$0xff] }
 0x494   : > { %1211 = vrot.lane.b32.xlu0 %v1203_v32, %s1966_s22  ;;  %1207 = vrot.lane.b32.xlu1 %v1201_v33, %s1967_s23  ;;  %v1199_v36 = vld [vmem:[#allocation2] ss:$4 sm:$0xff]  ;;  %s1620_s22 = sshll.u32 %s429_s21, 3  ;;  %s1544_s23 = scalar_lea.sflag [#allocation4], %s429_s21 }
 0x495   : > { %s431_s20 = scalar_lea.vmem [#allocation3], %s1620_s22  ;;  %s1892_s22 = sshll.u32 %s1969_s29, 4  ;;  %s1893_s22 = int_to_ptr.vmem [resolvable:$false] %s1892_s22 }
 0x496   : > { %s1557_s0 = sshll.u32 %s431_s20, 4  ;;  %s1894_s30 = scalar_lea.vmem %s1893_s22, 256  ;;  %s2280_s0 = int_to_ptr.vmem [resolvable:$true] %s1557_s0 }
 0x497   : > { %p1895_p0 = scmp.lt.s32.totalorder %s2280_s0, %s1893_s22 }
 0x498   : > { %1215 = vrot.lane.b32.xlu1 %v1205_v34, %s1968_s24  ;;  %s1888_s24 = scalar_lea.vmem %s2280_s0, 128 }
 0x499   : > { %p1889_p11 = scmp.ne.s32.totalorder %s2280_s0, %s1888_s24  ;;  %p1896_p1 = scmp.lt.s32.totalorder %s1894_s30, %s1888_s24 }
 0x49b   : > { %p1890_p12 = pnand %p1889_p11, %p2078_p5  ;;  %p1897_p2 = por %p1896_p1, %p1895_p0 }
 0x49d   : > { %p1891_p13 = pneg %p1890_p12 }
 0x49f   : > { %p1898_p3 = pnand %p1897_p2, %p1891_p13 }
 0x506   : > { %v1208_v35 = vpop.permute.xlu1 %1207  ;;  %v1212_v37 = vpop.permute.xlu0 %1211 }
 0x507   : > { %v1218_v38 = vsel %vm530_vm2, %v1199_v36, %v1208_v35  ;;  %v1644_v36 = vld [vmem:[%s2332_s11] ss:$0 sm:$0xff] }
 0x508   : > { %v1220_v40 = vsel %vm1219_vm4, %v1218_v38, %v1212_v37  ;;  %v1645_v38 = vld [vmem:[%s2333_s12] ss:$0 sm:$0xff] }
 0x50a   : > { %v1216_v39 = vpop.permute.xlu1 %1215 }
 0x50b   : > { %v1222_v41 = vsel %vm1221_vm5, %v1220_v40, %v1216_v39 }
 0x50c   : > { %1750 = vmatmul.mubr.msk.f32.vlgmr.msra.gmra.mrb[6].mxu0 %vm448_vm1, %v1222_v41 }
 0x50d   : > { %1779 = vmatprep.mubr.msk.f32.mxu0 %vm1953_vm0, %v1954_v6  ;;  %v1338_v6 = vld [vmem:[%s2328_s7] sm:$0xff]  ;;  %1802 = vmatpush3.bf16.msra.mxu0 %v1801_v60 }
 0x50e   : > { %v1795_v54 = vpack.c.bf16 %v1339_v53, %v1338_v6  ;;  %1803 = vmatprep.subr.bf16.mxu0 %v1952_v3 }
 0x510   : > { %1796 = vmatpush3.bf16.msra.mxu1 %v1795_v54 }
 0x511   : > { %1797 = vmatprep.subr.bf16.mxu1 %v1952_v3  ;;  %1805 = vmatpush3.bf16.msra.mxu0 %v1804_v62 }
 0x512   : > { %1806 = vmatprep.subr.bf16.mxu0 %v1952_v3 }
 0x515   : > { %1808 = vmatpush3.bf16.msra.mxu0 %v1807_v1 }
 0x516   : > { %1809 = vmatprep.subr.bf16.mxu0 %v1952_v3  ;;  %v1429_v3 = vld [vmem:[%s2330_s9 + $0x30] sm:$0xff] }
 0x517   : > { %v1810_v15 = vpack.c.bf16 %v1430_v14, %v1429_v3 }
 0x519   : > { %1811 = vmatpush3.bf16.msra.mxu0 %v1810_v15 }
 0x5df   : > { %v1303_v43 = vpop.f32.mrb[6].mxu0 }
 0x5e0   : > { %v1304_v44 = vadd.f32 %v1636_v42, %v1303_v43  ;;  %v1751_v45 = vpop.f32.mrb[7].mxu0 }
 0x5e2   : > { %v1307_v46 = vadd.f32 %v1304_v44, %v2112_v8  ;;  %v1340_v8 = vld [vmem:[%s2328_s7 + $0x10] sm:$0xff] }
 0x5e3   : > { %v1798_v56 = vpack.c.bf16 %v1341_v55, %v1340_v8 }
 0x5e4   : > { %v1310_v47 = vsel %vm448_vm1, %v1307_v46, 0.0 }
 0x5e5   : > { %1311 = vadd.xlane.f32.xlu0 %v1310_v47  ;;  %1799 = vmatpush3.bf16.msra.mxu1 %v1798_v56 }
 0x672   : > { %v1312_v48 = vpop.xlane.xlu0 %1311 }
 0x673   : > { %v1314_v49 = vmul.f32 0.03125, %v1312_v48 }
 0x675   : > { %v1315_v50 = vsub.f32 %v1307_v46, %v1314_v49 }
 0x677   : > { %v1316_v51 = vmul.f32 %v1315_v50, %v1315_v50 }
 0x679   : > { %v1317_v52 = vsel %vm448_vm1, %v1316_v51, 0.0 }
 0x67a   : > { %1318 = vadd.xlane.f32.xlu1 %v1317_v52 }
 0x707   : > { %v1319_v2 = vpop.xlane.xlu1 %1318 }
 0x708   : > { %v1320_v4 = vmul.f32 0.03125, %v1319_v2 }
 0x70a   : > { %v1321_v5 = vadd.f32 1e-05, %v1320_v4 }
 0x70c   : > { %1884 = vrsqrt.f32 %v1321_v5 }
 0x716   : > { %v1885_v7 = vpop.eup %1884 }
 0x717   : > { %v1323_v10 = vmul.f32 %v1885_v7, %v1315_v50 }
 0x719   : > { %v1330_v12 = vmul.f32 %v1638_v9, %v1323_v10 }
 0x71b   : > { %v1337_v13 = vadd.f32 %v1639_v11, %v1330_v12 }
 0x71d   : > { %1761 = vmatmul.mubr.msk.f32.vlgmr.msra.gmra.mrb[12].mxu1 %vm448_vm1, %v1337_v13 }
 0x7f0   : > { %v1418_v17 = vpop.f32.mrb[12].mxu1 }
 0x7f1   : > { %v1419_v18 = vadd.f32 %v1640_v16, %v1418_v17  ;;  %v1762_v19 = vpop.f32.mrb[13].mxu1 }
 0x7f3   : > { %v1422_v20 = vmax.f32 %v1419_v18, 0.0 }
 0x7f5   : > { %1780 = vmatmul.mubr.msk.f32.vlgmr.msra.gmra.mrb[8].mxu0 %vm1438_vm6, %v1422_v20 }
 0x8c8   : > { %v1508_v22 = vpop.f32.mrb[8].mxu0 }
 0x8c9   : > { %v1509_v23 = vadd.f32 %v1642_v21, %v1508_v22  ;;  %v1781_v24 = vpop.f32.mrb[9].mxu0 }
 0x8cb   : > { %v1512_v25 = vadd.f32 %v1509_v23, %v1337_v13 }
 0x8cd   : > { %v1515_v26 = vsel %vm448_vm1, %v1512_v25, 0.0 }
 0x8ce   : > { %1516 = vadd.xlane.f32.xlu0 %v1515_v26 }
 0x95b   : > { %v1517_v27 = vpop.xlane.xlu0 %1516 }
 0x95c   : > { %v1518_v28 = vmul.f32 0.03125, %v1517_v27 }
 0x95e   : > { %v1519_v29 = vsub.f32 %v1512_v25, %v1518_v28 }
 0x960   : > { %v1520_v30 = vmul.f32 %v1519_v29, %v1519_v29 }
 0x962   : > { %v1521_v31 = vsel %vm448_vm1, %v1520_v30, 0.0 }
 0x963   : > { %1522 = vadd.xlane.f32.xlu0 %v1521_v31 }
 0x9f0   : > { %v1523_v32 = vpop.xlane.xlu0 %1522 }
 0x9f1   : > { %v1524_v33 = vmul.f32 0.03125, %v1523_v32 }
 0x9f3   : > { %v1525_v34 = vadd.f32 1e-05, %v1524_v33 }
 0x9f5   : > { %1886 = vrsqrt.f32 %v1525_v34 }
 0x9ff   : > { %v1887_v35 = vpop.eup %1886 }
 0xa00   : > { %v1527_v37 = vmul.f32 %v1887_v35, %v1519_v29 }
 0xa02   : > { %v1534_v39 = vmul.f32 %v1644_v36, %v1527_v37 }
 0xa04   : > { %v1541_v40 = vadd.f32 %v1645_v38, %v1534_v39 }
 0xa06   : > { %1542 = vst.msk [vmem:[%s431_s20] sm:$0xff] %vm448_vm1, %v1541_v40 }
 0xa07   : > { %1901 = shalt.err (!%p1898_p3)
}
 0xa08   : > { %s1902_s2 = scalar_lea.hbm %s2278_s3, 128  ;;  %s1906_s16 = scalar_lea.hbm %s2334_s13, 256 }
 0xa09   : > { %p1903_p4 = scmp.ne.s32.totalorder %s2278_s3, %s1902_s2  ;;  %p1907_p9 = scmp.lt.u32.totalorder %s2278_s3, %s2334_s13 }
 0xa0a   : > { %p1908_p10 = scmp.lt.u32.totalorder %s1906_s16, %s1902_s2  ;;  %p1910_p12 = scmp.lt.u32.totalorder %s1902_s2, %s2278_s3 }
 0xa0b   : > { %p1904_p7 = pnand %p1903_p4, %p2078_p5 }
 0xa0c   : > { %p1909_p11 = por %p1908_p10, %p1907_p9 }
 0xa0d   : > { %p1905_p8 = pneg %p1904_p7 }
 0xa0e   : > { %p1911_p13 = por %p1910_p12, %p1909_p11 }
 0xa10   : > { %p1912_p0 = pnand %p1911_p13, %p1905_p8 }
 0xa12   : > { %1915 = shalt.err (!%p1912_p0)
}
 0xa13   : > { %1812 = dma.vmem_to_hbm [thread:$0]  (%p2078_p5), %s2280_s0, 128, %s2278_s3, %s1544_s23  }
 0xa14 PF: > { %p1818_p1 = scmp.ge.s32.totalorder %s1950_s28, 2  ;;  %s1569_s24 = sand.u32 1, %s1938_s25  }
 0xa15   : > { %s1570_s29 = scalar_lea.sflag [#allocation4], %s1569_s24 }
 0xa16   : > { %p1815_p2 = pnand %p1818_p1, %p2082_p6 }
 0xa18   : > { %1933 = dma.done.wait (!%p1815_p2), %s1570_s29, 128  }
 0xa19   : > { %1935 = vsyncadd (!%p1815_p2), %s1570_s29, 4294967168  ;;  %p23_p3 = scmp.ge.s32.totalorder %s2065_s14, 4   ;;  %s2345_s25 = smov %s1942_s26 }
 0xa1a   : > { %s2346_s26 = smov %s1946_s27  ;;  %s2347_s27 = smov %s2076_s17 }
 0xa1b   : > { %s2348_s28 = smov %s2065_s14  ;;  %25 = sbr.rel (!%p23_p3) target bundleno = 8 (0x8), region = 110 }
 0xa22   :  { %1575 = vsyncpa [#allocation4], 1 }
 0xa23   :  { %1577 = vsyncpa [#allocation4 + $0x1], 1 }

</bundles_post_ra>
